<compile_context>
chip_gen: v5e
topology: v5e:2x2
jax: 0.10.0
libtpu: 0.0.40
codegen_flags: <defaults>
</compile_context>

<pallas_src>
import jax
import jax.numpy as jnp
from jax.experimental import pallas as pl
from jax.experimental.pallas import tpu as pltpu

MFD = 128
NEG_SLOPE = 0.01  # nn.LeakyReLU() default


def _leaky(v):
    return jnp.where(v > 0, v, NEG_SLOPE * v)


def pick_batch_block(B, T, max_rows=512):
    """Largest batch block BB such that BB divides B, the grid keeps >= 2
    programs when B >= 2 (both v7x TensorCores busy), BB > 1 only when
    T % 8 == 0 (layout-free (BB,T)->(BB*T) merge), and BB*T <= max_rows."""
    best = 1
    for bb in range(1, B + 1):
        if B % bb:
            continue
        if bb > 1 and T % 8:
            continue
        if B >= 2 and B // bb < 2:
            continue
        if bb * T > max_rows:
            continue
        best = bb
    return best


def expand_grouped_weight(w, groups):
    # PyTorch Conv1d weight (Cout, Cin//groups, K) -> dense (K, Cin, Cout)
    # with zeros outside each group's block (exact equivalent of grouped conv).
    Cout, Cin_g, K = w.shape
    Cin = Cin_g * groups
    out_g = Cout // groups
    dense = jnp.zeros((Cout, Cin, K), w.dtype)
    for g in range(groups):
        dense = dense.at[g * out_g:(g + 1) * out_g,
                         g * Cin_g:(g + 1) * Cin_g, :].set(w[g * out_g:(g + 1) * out_g])
    return jnp.transpose(dense, (2, 1, 0))  # (K, Cin, Cout)


def sblock_forward(x_nct, params, *, ks, dilation, num_groups,
                   compute_dtype=jnp.bfloat16, batch_block=None):
    B, Cin, T = x_nct.shape
    G = num_groups
    C = params["wd"].shape[0]                 # middle width (128)
    feat_dim = params["wd1"].shape[0]
    assert ((ks - 1) * dilation) % 2 == 0, "same-length conv requires (ks-1)*dil even"
    assert Cin % G == 0 and C % G == 0, "grouped convs need channels % groups == 0"
    assert 2 * feat_dim <= C

    BB = batch_block if batch_block is not None else pick_batch_block(B, T)
    assert B % BB == 0 and (BB == 1 or T % 8 == 0)
    cdt = compute_dtype

    pad1 = (ks - 1) * dilation // 2          # conv1 / conv2 'same' padding
    pad3 = 1                                 # conv3 (ks=3, dil=1)
    pad_max = max(pad1, pad3)
    align = ((pad_max + 7) // 8) * 8         # sublane-aligned start of valid rows
    TP = align + T + pad_max                 # scratch rows (zero halos both ends)
    Tp_in = T + 2 * pad1                     # wrapper-padded conv1 input rows
    Cg = C // G
    M = BB * T                               # MXU row dimension per program
    inv_T = 1.0 / T

    # ---- wrapper glue: layout + compact weights (all plain XLA ops) ----------
    # conv1's zero halo is added here (2*pad1 rows of Cin channels) instead of
    # lane-padding Cin to 128, so no zero input/weight columns hit HBM.
    Cin_p = ((Cin + 7) // 8) * 8             # pad to one sublane only
    x = jnp.transpose(x_nct, (0, 2, 1))
    x = jnp.pad(x, ((0, 0), (pad1, pad1), (0, Cin_p - Cin))).astype(cdt)  # (B, Tp_in, Cin_p)

    w1 = expand_grouped_weight(params["w1"], G)                      # (ks, Cin, C)
    w1 = jnp.pad(w1, ((0, 0), (0, Cin_p - Cin), (0, 0))).astype(cdt)
    # conv2: compact per-group weights (G, ks, C/G, C/G); the block-diagonal
    # zero halves are no longer shipped nor multiplied.
    Cog = C // G
    w2 = jnp.stack([jnp.transpose(params["w2"][g * Cog:(g + 1) * Cog], (2, 1, 0))
                    for g in range(G)], axis=0).astype(cdt)
    w3 = jnp.transpose(params["w3"], (2, 1, 0)).astype(cdt)          # (3, C, C)
    b1 = params["b1"].reshape(1, -1).astype(jnp.float32)
    b2 = params["b2"].reshape(1, -1).astype(jnp.float32)
    b3 = params["b3"].reshape(1, -1).astype(jnp.float32)

    wd = jnp.transpose(params["wd"]).astype(cdt)                     # (C, C)
    bd = params["bd"].reshape(1, -1).astype(jnp.float32)
    # Fused + lane-padded output head: [wd1 | wd2] -> (C, 2*feat) -> (C, C)
    wh = jnp.concatenate([jnp.transpose(params["wd1"]),
                          jnp.transpose(params["wd2"])], axis=1)
    wh = jnp.pad(wh, ((0, 0), (0, C - 2 * feat_dim))).astype(cdt)
    bh = jnp.concatenate([params["bd1"], params["bd2"]])
    bh = jnp.pad(bh, (0, C - 2 * feat_dim)).reshape(1, -1).astype(jnp.float32)

    # ---- kernel ---------------------------------------------------------------
    def kernel(x_ref, w1_ref, b1_ref, w2_ref, b2_ref, w3_ref, b3_ref,
               wd_ref, bd_ref, wh_ref, bh_ref, out_ref, xpad_ref):
        # Every program fully (re)initializes the scratch it reads (halos once,
        # interior before each conv), so the scratch stays safe under
        # dimension_semantics=("parallel",) / megacore sharding.
        xpad_ref[:, 0:align, :] = jnp.zeros((BB, align, C), cdt)
        xpad_ref[:, align + T:TP, :] = jnp.zeros((BB, TP - align - T, C), cdt)

        # conv1 (grouped, densified over its tiny Cin): taps are static slices
        # of the wrapper-padded input; one (BB*T, Cin)@(Cin, C) matmul per tap.
        acc = jnp.zeros((M, C), jnp.float32)
        for k in range(ks):
            xk = x_ref[:, k * dilation:k * dilation + T, :].reshape(M, Cin_p)
            acc = acc + jnp.dot(xk, w1_ref[k], preferred_element_type=jnp.float32)
        h = acc + b1_ref[...]                                        # (M, C) f32

        # conv2 (grouped) + LeakyReLU: compact per-group weights, zero-halo taps.
        xpad_ref[:, align:align + T, :] = h.astype(cdt).reshape(BB, T, C)
        accs = [jnp.zeros((M, Cg), jnp.float32) for _ in range(G)]
        for k in range(ks):
            start = align - pad1 + k * dilation                      # static offset
            xk = xpad_ref[:, start:start + T, :].reshape(M, C)
            for g in range(G):
                accs[g] = accs[g] + jnp.dot(
                    xk[:, g * Cg:(g + 1) * Cg], w2_ref[g, k],
                    preferred_element_type=jnp.float32)
        h = _leaky(jnp.concatenate(accs, axis=-1) + b2_ref[...])

        # conv3 (dense)
        xpad_ref[:, align:align + T, :] = h.astype(cdt).reshape(BB, T, C)
        acc = jnp.zeros((M, C), jnp.float32)
        for k in range(3):
            start = align - pad3 + k
            xk = xpad_ref[:, start:start + T, :].reshape(M, C)
            acc = acc + jnp.dot(xk, w3_ref[k], preferred_element_type=jnp.float32)
        h = acc + b3_ref[...]                                        # (M, C) f32

        # time mean (f32) per batch element of the block
        rows = [jnp.sum(h[b * T:(b + 1) * T, :], axis=0, keepdims=True)
                for b in range(BB)]
        m = (rows[0] if BB == 1 else jnp.concatenate(rows, axis=0)) * inv_T  # (BB, C)

        z = _leaky(jnp.dot(m.astype(cdt), wd_ref[...],
                           preferred_element_type=jnp.float32) + bd_ref[...])
        # Fused, lane-dense output head: one (BB,128)@(128,128) matmul,
        # unmasked full-lane stores.
        out = jnp.dot(z.astype(cdt), wh_ref[...],
                      preferred_element_type=jnp.float32) + bh_ref[...]
        for b in range(BB):
            out_ref[b, :, :] = out[b:b + 1, :]

    operands = (x, w1, b1, w2, b2, w3, b3, wd, bd, wh, bh)

    flops = int(B * 2 * T * (ks * Cin_p * C + ks * C * Cg + 3 * C * C)
                + B * 2 * 2 * C * C)
    bytes_accessed = int(sum(int(a.size) * a.dtype.itemsize for a in operands)
                         + B * C * 4)

    def call(single_buffer_weights):
        def resident(arr):
            idx = lambda i, _nd=arr.ndim: (0,) * _nd
            if single_buffer_weights:
                # Weights never change across the grid: single-buffer them so the
                # freed VMEM goes to activation tiles (matters on v7x's 64 MiB).
                return pl.BlockSpec(arr.shape, idx, pipeline_mode=pl.Buffered(1))
            return pl.BlockSpec(arr.shape, idx)

        in_specs = ([pl.BlockSpec((BB, Tp_in, Cin_p), lambda i: (i, 0, 0))]
                    + [resident(a) for a in operands[1:]])
        return pl.pallas_call(
            kernel,
            grid=(B // BB,),
            in_specs=in_specs,
            out_specs=pl.BlockSpec((BB, 1, C), lambda i: (i, 0, 0)),
            out_shape=jax.ShapeDtypeStruct((B, 1, C), jnp.float32),
            scratch_shapes=[pltpu.VMEM((BB, TP, C), cdt)],
            compiler_params=pltpu.CompilerParams(
                dimension_semantics=("parallel",),      # megacore sharding on v7x
                vmem_limit_bytes=16 * 1024 * 1024,
            ),
            cost_estimate=pl.CostEstimate(flops=flops, transcendentals=0,
                                          bytes_accessed=bytes_accessed),
        )(*operands)

    try:
        out = call(True)
    except Exception:   # JAX build without pipeline_mode=pl.Buffered(1) support
        out = call(False)

    out = out.reshape(B, C)
    return out[:, :feat_dim], out[:, feat_dim:2 * feat_dim]


# ---------------- pure-JAX reference (for correctness check only) ----------------

def _conv1d_ref(x, w, b, dil, pad, groups):
    y = jax.lax.conv_general_dilated(
        x, w, window_strides=(1,), padding=[(pad, pad)],
        rhs_dilation=(dil,), dimension_numbers=("NCH", "OIH", "NCH"),
        feature_group_count=groups, precision=jax.lax.Precision.HIGHEST)
    return y + b[None, :, None]


def sblock_reference(x, params, *, ks, dilation, num_groups):
    pad = (ks - 1) * dilation // 2
    hp = jax.lax.Precision.HIGHEST
    h = _conv1d_ref(x, params["w1"], params["b1"], dilation, pad, num_groups)
    h = _conv1d_ref(h, params["w2"], params["b2"], dilation, pad, num_groups)
    h = _leaky(h)
    h = _conv1d_ref(h, params["w3"], params["b3"], 1, 1, 1)
    m = jnp.mean(h, axis=2)
    z = _leaky(jnp.dot(m, params["wd"].T, precision=hp) + params["bd"])
    x1 = jnp.dot(z, params["wd1"].T, precision=hp) + params["bd1"]
    x2 = jnp.dot(z, params["wd2"].T, precision=hp) + params["bd2"]
    return x1, x2


if __name__ == "__main__":
    B, feat_dim, T = 2, 4, 16
    ks, dilation, num_groups = 3, 1, 2

    key = jax.random.PRNGKey(0)
    subkeys = jax.random.split(key, 14)
    s = 0.1
    params = {
        "w1": s * jax.random.normal(subkeys[0], (MFD, feat_dim // num_groups, ks), jnp.float32),
        "b1": s * jax.random.normal(subkeys[1], (MFD,), jnp.float32),
        "w2": s * jax.random.normal(subkeys[2], (MFD, MFD // num_groups, ks), jnp.float32),
        "b2": s * jax.random.normal(subkeys[3], (MFD,), jnp.float32),
        "w3": s * jax.random.normal(subkeys[4], (MFD, MFD, 3), jnp.float32),
        "b3": s * jax.random.normal(subkeys[5], (MFD,), jnp.float32),
        "wd": s * jax.random.normal(subkeys[6], (MFD, MFD), jnp.float32),
        "bd": s * jax.random.normal(subkeys[7], (MFD,), jnp.float32),
        "wd1": s * jax.random.normal(subkeys[8], (feat_dim, MFD), jnp.float32),
        "bd1": s * jax.random.normal(subkeys[9], (feat_dim,), jnp.float32),
        "wd2": s * jax.random.normal(subkeys[10], (feat_dim, MFD), jnp.float32),
        "bd2": s * jax.random.normal(subkeys[11], (feat_dim,), jnp.float32),
    }
    x = jax.random.normal(subkeys[12], (B, feat_dim, T), jnp.float32)  # NCW, like PyTorch

    r1, r2 = sblock_reference(x, params, ks=ks, dilation=dilation, num_groups=num_groups)

    # bf16 MXU operands on every generation (v5e's MXU is bf16-native too);
    # f32 accumulation / biases / time-mean.  B=2 -> BB=1, grid=(2,): one
    # program per v7x TensorCore.
    y1, y2 = sblock_forward(x, params, ks=ks, dilation=dilation, num_groups=num_groups)
    jax.block_until_ready((y1, y2))
    assert y1.shape == (B, feat_dim) and y2.shape == (B, feat_dim)
    assert jnp.allclose(y1, r1, atol=5e-2, rtol=5e-2)
    assert jnp.allclose(y2, r2, atol=5e-2, rtol=5e-2)

    # f32 operand path (numerics check; tolerance tightened vs. the previous
    # 1e-2 while staying robust to MXU f32 pass-precision differences).
    x1, x2 = sblock_forward(x, params, ks=ks, dilation=dilation,
                            num_groups=num_groups, compute_dtype=jnp.float32)
    jax.block_until_ready((x1, x2))
    assert jnp.allclose(x1, r1, atol=5e-3, rtol=5e-3)
    assert jnp.allclose(x2, r2, atol=5e-3, rtol=5e-3)

    # Batch-blocked path (review item 1): B=16 -> BB=8, so every conv tap is a
    # single (128, C)@(C, C) MXU matmul and the grid of 2 stays balanced across
    # both v7x TensorCores.
    Bb = 16
    xb = jax.random.normal(subkeys[13], (Bb, feat_dim, T), jnp.float32)
    rb1, rb2 = sblock_reference(xb, params, ks=ks, dilation=dilation, num_groups=num_groups)
    z1, z2 = sblock_forward(xb, params, ks=ks, dilation=dilation, num_groups=num_groups)
    jax.block_until_ready((z1, z2))
    assert z1.shape == (Bb, feat_dim) and z2.shape == (Bb, feat_dim)
    assert jnp.allclose(z1, rb1, atol=5e-2, rtol=5e-2)
    assert jnp.allclose(z2, rb2, atol=5e-2, rtol=5e-2)

    print("KERNEL_OK")
</pallas_src>

<mosaic_0001>
module attributes {stable_mosaic.version = 11 : i64} {
  func.func @kernel(%arg0: i32, %arg1: memref<1x18x8xbf16, #tpu.memory_space<vmem>>, %arg2: memref<3x8x128xbf16, #tpu.memory_space<vmem>>, %arg3: memref<1x128xf32, #tpu.memory_space<vmem>>, %arg4: memref<2x3x64x64xbf16, #tpu.memory_space<vmem>>, %arg5: memref<1x128xf32, #tpu.memory_space<vmem>>, %arg6: memref<3x128x128xbf16, #tpu.memory_space<vmem>>, %arg7: memref<1x128xf32, #tpu.memory_space<vmem>>, %arg8: memref<128x128xbf16, #tpu.memory_space<vmem>>, %arg9: memref<1x128xf32, #tpu.memory_space<vmem>>, %arg10: memref<128x128xbf16, #tpu.memory_space<vmem>>, %arg11: memref<1x128xf32, #tpu.memory_space<vmem>>, %arg12: memref<1x1x128xf32, #tpu.memory_space<vmem>>, %arg13: memref<1x25x128xbf16, #tpu.memory_space<vmem>>) attributes {dimension_semantics = [#tpu.dimension_semantics<parallel>], iteration_bounds = array<i64: 2>, scalar_prefetch = 0 : i64, scratch_operands = 1 : i64, tpu.core_type = #tpu.core_type<tc>, window_params = [{transform_indices = @transform_0, window_bounds = array<i64: 1, 18, 8>}, {pipeline_mode = #tpu.pipeline_mode<synchronous>, transform_indices = @transform_1, window_bounds = array<i64: 3, 8, 128>}, {pipeline_mode = #tpu.pipeline_mode<synchronous>, transform_indices = @transform_2, window_bounds = array<i64: 1, 128>}, {pipeline_mode = #tpu.pipeline_mode<synchronous>, transform_indices = @transform_3, window_bounds = array<i64: 2, 3, 64, 64>}, {pipeline_mode = #tpu.pipeline_mode<synchronous>, transform_indices = @transform_4, window_bounds = array<i64: 1, 128>}, {pipeline_mode = #tpu.pipeline_mode<synchronous>, transform_indices = @transform_5, window_bounds = array<i64: 3, 128, 128>}, {pipeline_mode = #tpu.pipeline_mode<synchronous>, transform_indices = @transform_6, window_bounds = array<i64: 1, 128>}, {pipeline_mode = #tpu.pipeline_mode<synchronous>, transform_indices = @transform_7, window_bounds = array<i64: 128, 128>}, {pipeline_mode = #tpu.pipeline_mode<synchronous>, transform_indices = @transform_8, window_bounds = array<i64: 1, 128>}, {pipeline_mode = #tpu.pipeline_mode<synchronous>, transform_indices = @transform_9, window_bounds = array<i64: 128, 128>}, {pipeline_mode = #tpu.pipeline_mode<synchronous>, transform_indices = @transform_10, window_bounds = array<i64: 1, 128>}, {transform_indices = @transform_11, window_bounds = array<i64: 1, 1, 128>}]} {
    %cst = arith.constant 0.000000e+00 : bf16
    %0 = vector.broadcast %cst : bf16 to vector<1x8x128xbf16>
    %c0 = arith.constant 0 : index
    %c0_0 = arith.constant 0 : index
    %c0_1 = arith.constant 0 : index
    %1 = vector.load %arg13[%c0, %c0_0, %c0_1] : memref<1x25x128xbf16, #tpu.memory_space<vmem>>, vector<1x8x128xbf16>
    tpu.vector_store %arg13[%c0, %c0_0, %c0_1], %0 {strides = array<i32>} : memref<1x25x128xbf16, #tpu.memory_space<vmem>>, vector<1x8x128xbf16>,
    %cst_2 = arith.constant 0.000000e+00 : bf16
    %2 = vector.broadcast %cst_2 : bf16 to vector<1x1x128xbf16>
    %c0_3 = arith.constant 0 : index
    %c24 = arith.constant 24 : index
    %c0_4 = arith.constant 0 : index
    %3 = vector.load %arg13[%c0_3, %c24, %c0_4] : memref<1x25x128xbf16, #tpu.memory_space<vmem>>, vector<1x1x128xbf16>
    tpu.vector_store %arg13[%c0_3, %c24, %c0_4], %2 {strides = array<i32>} : memref<1x25x128xbf16, #tpu.memory_space<vmem>>, vector<1x1x128xbf16>,
    %cst_5 = arith.constant 0.000000e+00 : f32
    %4 = vector.broadcast %cst_5 : f32 to vector<16x128xf32>
    %c0_6 = arith.constant 0 : index
    %c0_7 = arith.constant 0 : index
    %c0_8 = arith.constant 0 : index
    %5 = vector.load %arg1[%c0_6, %c0_7, %c0_8] : memref<1x18x8xbf16, #tpu.memory_space<vmem>>, vector<1x16x8xbf16>
    %6 = vector.shape_cast %5 : vector<1x16x8xbf16> to vector<16x8xbf16>
    %c0_9 = arith.constant 0 : index
    %c0_10 = arith.constant 0 : index
    %c0_11 = arith.constant 0 : index
    %7 = vector.load %arg2[%c0_9, %c0_10, %c0_11] : memref<3x8x128xbf16, #tpu.memory_space<vmem>>, vector<1x8x128xbf16>
    %8 = vector.shape_cast %7 : vector<1x8x128xbf16> to vector<8x128xbf16>
    %cst_12 = arith.constant dense<0.000000e+00> : vector<16x128xf32>
    %9 = tpu.matmul %6, %8, %cst_12 {dimension_numbers = #tpu.dot_dimension_numbers<[1], [0], [0], [1], [0, 0, 1, 1], [], []>} : vector<16x8xbf16>, vector<8x128xbf16>, vector<16x128xf32> -> vector<16x128xf32>
    %10 = arith.addf %4, %9 : vector<16x128xf32>
    %c0_13 = arith.constant 0 : index
    %c1 = arith.constant 1 : index
    %c0_14 = arith.constant 0 : index
    %11 = vector.load %arg1[%c0_13, %c1, %c0_14] : memref<1x18x8xbf16, #tpu.memory_space<vmem>>, vector<1x16x8xbf16>
    %12 = vector.shape_cast %11 : vector<1x16x8xbf16> to vector<16x8xbf16>
    %c1_15 = arith.constant 1 : index
    %c0_16 = arith.constant 0 : index
    %c0_17 = arith.constant 0 : index
    %13 = vector.load %arg2[%c1_15, %c0_16, %c0_17] : memref<3x8x128xbf16, #tpu.memory_space<vmem>>, vector<1x8x128xbf16>
    %14 = vector.shape_cast %13 : vector<1x8x128xbf16> to vector<8x128xbf16>
    %cst_18 = arith.constant dense<0.000000e+00> : vector<16x128xf32>
    %15 = tpu.matmul %12, %14, %cst_18 {dimension_numbers = #tpu.dot_dimension_numbers<[1], [0], [0], [1], [0, 0, 1, 1], [], []>} : vector<16x8xbf16>, vector<8x128xbf16>, vector<16x128xf32> -> vector<16x128xf32>
    %16 = arith.addf %10, %15 : vector<16x128xf32>
    %c0_19 = arith.constant 0 : index
    %c2 = arith.constant 2 : index
    %c0_20 = arith.constant 0 : index
    %17 = vector.load %arg1[%c0_19, %c2, %c0_20] : memref<1x18x8xbf16, #tpu.memory_space<vmem>>, vector<1x16x8xbf16>
    %18 = vector.shape_cast %17 : vector<1x16x8xbf16> to vector<16x8xbf16>
    %c2_21 = arith.constant 2 : index
    %c0_22 = arith.constant 0 : index
    %c0_23 = arith.constant 0 : index
    %19 = vector.load %arg2[%c2_21, %c0_22, %c0_23] : memref<3x8x128xbf16, #tpu.memory_space<vmem>>, vector<1x8x128xbf16>
    %20 = vector.shape_cast %19 : vector<1x8x128xbf16> to vector<8x128xbf16>
    %cst_24 = arith.constant dense<0.000000e+00> : vector<16x128xf32>
    %21 = tpu.matmul %18, %20, %cst_24 {dimension_numbers = #tpu.dot_dimension_numbers<[1], [0], [0], [1], [0, 0, 1, 1], [], []>} : vector<16x8xbf16>, vector<8x128xbf16>, vector<16x128xf32> -> vector<16x128xf32>
    %22 = arith.addf %16, %21 : vector<16x128xf32>
    %c0_25 = arith.constant 0 : index
    %c0_26 = arith.constant 0 : index
    %23 = vector.load %arg3[%c0_25, %c0_26] : memref<1x128xf32, #tpu.memory_space<vmem>>, vector<1x128xf32>
    %24 = vector.broadcast %23 : vector<1x128xf32> to vector<16x128xf32>
    %25 = arith.addf %22, %24 : vector<16x128xf32>
    %26 = arith.truncf %25 : vector<16x128xf32> to vector<16x128xbf16>
    %27 = vector.shape_cast %26 : vector<16x128xbf16> to vector<1x16x128xbf16>
    %c0_27 = arith.constant 0 : index
    %c8 = arith.constant 8 : index
    %c0_28 = arith.constant 0 : index
    %28 = vector.load %arg13[%c0_27, %c8, %c0_28] : memref<1x25x128xbf16, #tpu.memory_space<vmem>>, vector<1x16x128xbf16>
    tpu.vector_store %arg13[%c0_27, %c8, %c0_28], %27 {strides = array<i32>} : memref<1x25x128xbf16, #tpu.memory_space<vmem>>, vector<1x16x128xbf16>,
    %cst_29 = arith.constant 0.000000e+00 : f32
    %29 = vector.broadcast %cst_29 : f32 to vector<16x64xf32>
    %cst_30 = arith.constant 0.000000e+00 : f32
    %30 = vector.broadcast %cst_30 : f32 to vector<16x64xf32>
    %c0_31 = arith.constant 0 : index
    %c7 = arith.constant 7 : index
    %c0_32 = arith.constant 0 : index
    %31 = vector.load %arg13[%c0_31, %c7, %c0_32] : memref<1x25x128xbf16, #tpu.memory_space<vmem>>, vector<1x16x128xbf16>
    %32 = vector.shape_cast %31 : vector<1x16x128xbf16> to vector<16x128xbf16>
    %33 = vector.extract_strided_slice %32 {offsets = [0, 0], sizes = [16, 64], strides = [1, 1]} : vector<16x128xbf16> to vector<16x64xbf16>
    %c0_33 = arith.constant 0 : index
    %c0_34 = arith.constant 0 : index
    %c0_35 = arith.constant 0 : index
    %c0_36 = arith.constant 0 : index
    %34 = vector.load %arg4[%c0_33, %c0_34, %c0_35, %c0_36] : memref<2x3x64x64xbf16, #tpu.memory_space<vmem>>, vector<1x1x64x64xbf16>
    %35 = vector.shape_cast %34 : vector<1x1x64x64xbf16> to vector<64x64xbf16>
    %cst_37 = arith.constant dense<0.000000e+00> : vector<16x64xf32>
    %36 = tpu.matmul %33, %35, %cst_37 {dimension_numbers = #tpu.dot_dimension_numbers<[1], [0], [0], [1], [0, 0, 1, 1], [], []>} : vector<16x64xbf16>, vector<64x64xbf16>, vector<16x64xf32> -> vector<16x64xf32>
    %37 = arith.addf %29, %36 : vector<16x64xf32>
    %38 = vector.extract_strided_slice %32 {offsets = [0, 64], sizes = [16, 64], strides = [1, 1]} : vector<16x128xbf16> to vector<16x64xbf16>
    %c1_38 = arith.constant 1 : index
    %c0_39 = arith.constant 0 : index
    %c0_40 = arith.constant 0 : index
    %c0_41 = arith.constant 0 : index
    %39 = vector.load %arg4[%c1_38, %c0_39, %c0_40, %c0_41] : memref<2x3x64x64xbf16, #tpu.memory_space<vmem>>, vector<1x1x64x64xbf16>
    %40 = vector.shape_cast %39 : vector<1x1x64x64xbf16> to vector<64x64xbf16>
    %cst_42 = arith.constant dense<0.000000e+00> : vector<16x64xf32>
    %41 = tpu.matmul %38, %40, %cst_42 {dimension_numbers = #tpu.dot_dimension_numbers<[1], [0], [0], [1], [0, 0, 1, 1], [], []>} : vector<16x64xbf16>, vector<64x64xbf16>, vector<16x64xf32> -> vector<16x64xf32>
    %42 = arith.addf %30, %41 : vector<16x64xf32>
    %c0_43 = arith.constant 0 : index
    %c8_44 = arith.constant 8 : index
    %c0_45 = arith.constant 0 : index
    %43 = vector.load %arg13[%c0_43, %c8_44, %c0_45] : memref<1x25x128xbf16, #tpu.memory_space<vmem>>, vector<1x16x128xbf16>
    %44 = vector.shape_cast %43 : vector<1x16x128xbf16> to vector<16x128xbf16>
    %45 = vector.extract_strided_slice %44 {offsets = [0, 0], sizes = [16, 64], strides = [1, 1]} : vector<16x128xbf16> to vector<16x64xbf16>
    %c0_46 = arith.constant 0 : index
    %c1_47 = arith.constant 1 : index
    %c0_48 = arith.constant 0 : index
    %c0_49 = arith.constant 0 : index
    %46 = vector.load %arg4[%c0_46, %c1_47, %c0_48, %c0_49] : memref<2x3x64x64xbf16, #tpu.memory_space<vmem>>, vector<1x1x64x64xbf16>
    %47 = vector.shape_cast %46 : vector<1x1x64x64xbf16> to vector<64x64xbf16>
    %cst_50 = arith.constant dense<0.000000e+00> : vector<16x64xf32>
    %48 = tpu.matmul %45, %47, %cst_50 {dimension_numbers = #tpu.dot_dimension_numbers<[1], [0], [0], [1], [0, 0, 1, 1], [], []>} : vector<16x64xbf16>, vector<64x64xbf16>, vector<16x64xf32> -> vector<16x64xf32>
    %49 = arith.addf %37, %48 : vector<16x64xf32>
    %50 = vector.extract_strided_slice %44 {offsets = [0, 64], sizes = [16, 64], strides = [1, 1]} : vector<16x128xbf16> to vector<16x64xbf16>
    %c1_51 = arith.constant 1 : index
    %c1_52 = arith.constant 1 : index
    %c0_53 = arith.constant 0 : index
    %c0_54 = arith.constant 0 : index
    %51 = vector.load %arg4[%c1_51, %c1_52, %c0_53, %c0_54] : memref<2x3x64x64xbf16, #tpu.memory_space<vmem>>, vector<1x1x64x64xbf16>
    %52 = vector.shape_cast %51 : vector<1x1x64x64xbf16> to vector<64x64xbf16>
    %cst_55 = arith.constant dense<0.000000e+00> : vector<16x64xf32>
    %53 = tpu.matmul %50, %52, %cst_55 {dimension_numbers = #tpu.dot_dimension_numbers<[1], [0], [0], [1], [0, 0, 1, 1], [], []>} : vector<16x64xbf16>, vector<64x64xbf16>, vector<16x64xf32> -> vector<16x64xf32>
    %54 = arith.addf %42, %53 : vector<16x64xf32>
    %c0_56 = arith.constant 0 : index
    %c9 = arith.constant 9 : index
    %c0_57 = arith.constant 0 : index
    %55 = vector.load %arg13[%c0_56, %c9, %c0_57] : memref<1x25x128xbf16, #tpu.memory_space<vmem>>, vector<1x16x128xbf16>
    %56 = vector.shape_cast %55 : vector<1x16x128xbf16> to vector<16x128xbf16>
    %57 = vector.extract_strided_slice %56 {offsets = [0, 0], sizes = [16, 64], strides = [1, 1]} : vector<16x128xbf16> to vector<16x64xbf16>
    %c0_58 = arith.constant 0 : index
    %c2_59 = arith.constant 2 : index
    %c0_60 = arith.constant 0 : index
    %c0_61 = arith.constant 0 : index
    %58 = vector.load %arg4[%c0_58, %c2_59, %c0_60, %c0_61] : memref<2x3x64x64xbf16, #tpu.memory_space<vmem>>, vector<1x1x64x64xbf16>
    %59 = vector.shape_cast %58 : vector<1x1x64x64xbf16> to vector<64x64xbf16>
    %cst_62 = arith.constant dense<0.000000e+00> : vector<16x64xf32>
    %60 = tpu.matmul %57, %59, %cst_62 {dimension_numbers = #tpu.dot_dimension_numbers<[1], [0], [0], [1], [0, 0, 1, 1], [], []>} : vector<16x64xbf16>, vector<64x64xbf16>, vector<16x64xf32> -> vector<16x64xf32>
    %61 = arith.addf %49, %60 : vector<16x64xf32>
    %62 = vector.extract_strided_slice %56 {offsets = [0, 64], sizes = [16, 64], strides = [1, 1]} : vector<16x128xbf16> to vector<16x64xbf16>
    %c1_63 = arith.constant 1 : index
    %c2_64 = arith.constant 2 : index
    %c0_65 = arith.constant 0 : index
    %c0_66 = arith.constant 0 : index
    %63 = vector.load %arg4[%c1_63, %c2_64, %c0_65, %c0_66] : memref<2x3x64x64xbf16, #tpu.memory_space<vmem>>, vector<1x1x64x64xbf16>
    %64 = vector.shape_cast %63 : vector<1x1x64x64xbf16> to vector<64x64xbf16>
    %cst_67 = arith.constant dense<0.000000e+00> : vector<16x64xf32>
    %65 = tpu.matmul %62, %64, %cst_67 {dimension_numbers = #tpu.dot_dimension_numbers<[1], [0], [0], [1], [0, 0, 1, 1], [], []>} : vector<16x64xbf16>, vector<64x64xbf16>, vector<16x64xf32> -> vector<16x64xf32>
    %66 = arith.addf %54, %65 : vector<16x64xf32>
    %67 = tpu.concatenate %61, %66 in 1 : vector<16x64xf32>, vector<16x64xf32> -> vector<16x128xf32>
    %c0_68 = arith.constant 0 : index
    %c0_69 = arith.constant 0 : index
    %68 = vector.load %arg5[%c0_68, %c0_69] : memref<1x128xf32, #tpu.memory_space<vmem>>, vector<1x128xf32>
    %69 = vector.broadcast %68 : vector<1x128xf32> to vector<16x128xf32>
    %70 = arith.addf %67, %69 : vector<16x128xf32>
    %cst_70 = arith.constant 0.000000e+00 : f32
    %71 = vector.broadcast %cst_70 : f32 to vector<16x128xf32>
    %72 = arith.cmpf ogt, %70, %71 : vector<16x128xf32>
    %cst_71 = arith.constant 0.00999999977 : f32
    %73 = vector.broadcast %cst_71 : f32 to vector<16x128xf32>
    %74 = arith.mulf %73, %70 : vector<16x128xf32>
    %75 = arith.select %72, %70, %74 : vector<16x128xi1>, vector<16x128xf32>
    %76 = arith.truncf %75 : vector<16x128xf32> to vector<16x128xbf16>
    %77 = vector.shape_cast %76 : vector<16x128xbf16> to vector<1x16x128xbf16>
    %c0_72 = arith.constant 0 : index
    %c8_73 = arith.constant 8 : index
    %c0_74 = arith.constant 0 : index
    %78 = vector.load %arg13[%c0_72, %c8_73, %c0_74] : memref<1x25x128xbf16, #tpu.memory_space<vmem>>, vector<1x16x128xbf16>
    tpu.vector_store %arg13[%c0_72, %c8_73, %c0_74], %77 {strides = array<i32>} : memref<1x25x128xbf16, #tpu.memory_space<vmem>>, vector<1x16x128xbf16>,
    %cst_75 = arith.constant 0.000000e+00 : f32
    %79 = vector.broadcast %cst_75 : f32 to vector<16x128xf32>
    %c0_76 = arith.constant 0 : index
    %c7_77 = arith.constant 7 : index
    %c0_78 = arith.constant 0 : index
    %80 = vector.load %arg13[%c0_76, %c7_77, %c0_78] : memref<1x25x128xbf16, #tpu.memory_space<vmem>>, vector<1x16x128xbf16>
    %81 = vector.shape_cast %80 : vector<1x16x128xbf16> to vector<16x128xbf16>
    %c0_79 = arith.constant 0 : index
    %c0_80 = arith.constant 0 : index
    %c0_81 = arith.constant 0 : index
    %82 = vector.load %arg6[%c0_79, %c0_80, %c0_81] : memref<3x128x128xbf16, #tpu.memory_space<vmem>>, vector<1x128x128xbf16>
    %83 = vector.shape_cast %82 : vector<1x128x128xbf16> to vector<128x128xbf16>
    %cst_82 = arith.constant dense<0.000000e+00> : vector<16x128xf32>
    %84 = tpu.matmul %81, %83, %cst_82 {dimension_numbers = #tpu.dot_dimension_numbers<[1], [0], [0], [1], [0, 0, 1, 1], [], []>} : vector<16x128xbf16>, vector<128x128xbf16>, vector<16x128xf32> -> vector<16x128xf32>
    %85 = arith.addf %79, %84 : vector<16x128xf32>
    %c0_83 = arith.constant 0 : index
    %c8_84 = arith.constant 8 : index
    %c0_85 = arith.constant 0 : index
    %86 = vector.load %arg13[%c0_83, %c8_84, %c0_85] : memref<1x25x128xbf16, #tpu.memory_space<vmem>>, vector<1x16x128xbf16>
    %87 = vector.shape_cast %86 : vector<1x16x128xbf16> to vector<16x128xbf16>
    %c1_86 = arith.constant 1 : index
    %c0_87 = arith.constant 0 : index
    %c0_88 = arith.constant 0 : index
    %88 = vector.load %arg6[%c1_86, %c0_87, %c0_88] : memref<3x128x128xbf16, #tpu.memory_space<vmem>>, vector<1x128x128xbf16>
    %89 = vector.shape_cast %88 : vector<1x128x128xbf16> to vector<128x128xbf16>
    %cst_89 = arith.constant dense<0.000000e+00> : vector<16x128xf32>
    %90 = tpu.matmul %87, %89, %cst_89 {dimension_numbers = #tpu.dot_dimension_numbers<[1], [0], [0], [1], [0, 0, 1, 1], [], []>} : vector<16x128xbf16>, vector<128x128xbf16>, vector<16x128xf32> -> vector<16x128xf32>
    %91 = arith.addf %85, %90 : vector<16x128xf32>
    %c0_90 = arith.constant 0 : index
    %c9_91 = arith.constant 9 : index
    %c0_92 = arith.constant 0 : index
    %92 = vector.load %arg13[%c0_90, %c9_91, %c0_92] : memref<1x25x128xbf16, #tpu.memory_space<vmem>>, vector<1x16x128xbf16>
    %93 = vector.shape_cast %92 : vector<1x16x128xbf16> to vector<16x128xbf16>
    %c2_93 = arith.constant 2 : index
    %c0_94 = arith.constant 0 : index
    %c0_95 = arith.constant 0 : index
    %94 = vector.load %arg6[%c2_93, %c0_94, %c0_95] : memref<3x128x128xbf16, #tpu.memory_space<vmem>>, vector<1x128x128xbf16>
    %95 = vector.shape_cast %94 : vector<1x128x128xbf16> to vector<128x128xbf16>
    %cst_96 = arith.constant dense<0.000000e+00> : vector<16x128xf32>
    %96 = tpu.matmul %93, %95, %cst_96 {dimension_numbers = #tpu.dot_dimension_numbers<[1], [0], [0], [1], [0, 0, 1, 1], [], []>} : vector<16x128xbf16>, vector<128x128xbf16>, vector<16x128xf32> -> vector<16x128xf32>
    %97 = arith.addf %91, %96 : vector<16x128xf32>
    %c0_97 = arith.constant 0 : index
    %c0_98 = arith.constant 0 : index
    %98 = vector.load %arg7[%c0_97, %c0_98] : memref<1x128xf32, #tpu.memory_space<vmem>>, vector<1x128xf32>
    %99 = vector.broadcast %98 : vector<1x128xf32> to vector<16x128xf32>
    %100 = arith.addf %97, %99 : vector<16x128xf32>
    %cst_99 = arith.constant dense<0.000000e+00> : vector<128xf32>
    %101 = vector.multi_reduction <add>, %100, %cst_99 [0] : vector<16x128xf32> to vector<128xf32>
    %102 = vector.shape_cast %101 : vector<128xf32> to vector<1x128xf32>
    %cst_100 = arith.constant 6.250000e-02 : f32
    %103 = vector.broadcast %cst_100 : f32 to vector<1x128xf32>
    %104 = arith.mulf %102, %103 : vector<1x128xf32>
    %105 = arith.truncf %104 : vector<1x128xf32> to vector<1x128xbf16>
    %c0_101 = arith.constant 0 : index
    %c0_102 = arith.constant 0 : index
    %106 = vector.load %arg8[%c0_101, %c0_102] : memref<128x128xbf16, #tpu.memory_space<vmem>>, vector<128x128xbf16>
    %cst_103 = arith.constant dense<0.000000e+00> : vector<1x128xf32>
    %107 = tpu.matmul %105, %106, %cst_103 {dimension_numbers = #tpu.dot_dimension_numbers<[1], [0], [0], [1], [0, 0, 1, 1], [], []>} : vector<1x128xbf16>, vector<128x128xbf16>, vector<1x128xf32> -> vector<1x128xf32>
    %c0_104 = arith.constant 0 : index
    %c0_105 = arith.constant 0 : index
    %108 = vector.load %arg9[%c0_104, %c0_105] : memref<1x128xf32, #tpu.memory_space<vmem>>, vector<1x128xf32>
    %109 = arith.addf %107, %108 : vector<1x128xf32>
    %cst_106 = arith.constant 0.000000e+00 : f32
    %110 = vector.broadcast %cst_106 : f32 to vector<1x128xf32>
    %111 = arith.cmpf ogt, %109, %110 : vector<1x128xf32>
    %cst_107 = arith.constant 0.00999999977 : f32
    %112 = vector.broadcast %cst_107 : f32 to vector<1x128xf32>
    %113 = arith.mulf %112, %109 : vector<1x128xf32>
    %114 = arith.select %111, %109, %113 : vector<1x128xi1>, vector<1x128xf32>
    %115 = arith.truncf %114 : vector<1x128xf32> to vector<1x128xbf16>
    %c0_108 = arith.constant 0 : index
    %c0_109 = arith.constant 0 : index
    %116 = vector.load %arg10[%c0_108, %c0_109] : memref<128x128xbf16, #tpu.memory_space<vmem>>, vector<128x128xbf16>
    %cst_110 = arith.constant dense<0.000000e+00> : vector<1x128xf32>
    %117 = tpu.matmul %115, %116, %cst_110 {dimension_numbers = #tpu.dot_dimension_numbers<[1], [0], [0], [1], [0, 0, 1, 1], [], []>} : vector<1x128xbf16>, vector<128x128xbf16>, vector<1x128xf32> -> vector<1x128xf32>
    %c0_111 = arith.constant 0 : index
    %c0_112 = arith.constant 0 : index
    %118 = vector.load %arg11[%c0_111, %c0_112] : memref<1x128xf32, #tpu.memory_space<vmem>>, vector<1x128xf32>
    %119 = arith.addf %117, %118 : vector<1x128xf32>
    %c0_113 = arith.constant 0 : index
    %c0_114 = arith.constant 0 : index
    %c0_115 = arith.constant 0 : index
    %120 = vector.load %arg12[%c0_113, %c0_114, %c0_115] : memref<1x1x128xf32, #tpu.memory_space<vmem>>, vector<1x1x128xf32>
    %121 = vector.shape_cast %120 : vector<1x1x128xf32> to vector<1x128xf32>
    %122 = vector.shape_cast %119 : vector<1x128xf32> to vector<1x1x128xf32>
    tpu.vector_store %arg12[%c0_113, %c0_114, %c0_115], %122 {strides = array<i32>} : memref<1x1x128xf32, #tpu.memory_space<vmem>>, vector<1x1x128xf32>,
    return
  }
  func.func @transform_0(%arg0: i32) -> (i32, i32, i32) {
    %c0_i32 = arith.constant 0 : i32
    %c0_i32_0 = arith.constant 0 : i32
    %c0_i32_1 = arith.constant 0 : i32
    return %arg0, %c0_i32, %c0_i32_0 : i32, i32, i32
  }
  func.func @transform_1(%arg0: i32) -> (i32, i32, i32) {
    %c0_i32 = arith.constant 0 : i32
    %c0_i32_0 = arith.constant 0 : i32
    %c0_i32_1 = arith.constant 0 : i32
    %c0_i32_2 = arith.constant 0 : i32
    return %c0_i32, %c0_i32_0, %c0_i32_1 : i32, i32, i32
  }
  func.func @transform_2(%arg0: i32) -> (i32, i32) {
    %c0_i32 = arith.constant 0 : i32
    %c0_i32_0 = arith.constant 0 : i32
    %c0_i32_1 = arith.constant 0 : i32
    return %c0_i32, %c0_i32_0 : i32, i32
  }
  func.func @transform_3(%arg0: i32) -> (i32, i32, i32, i32) {
    %c0_i32 = arith.constant 0 : i32
    %c0_i32_0 = arith.constant 0 : i32
    %c0_i32_1 = arith.constant 0 : i32
    %c0_i32_2 = arith.constant 0 : i32
    %c0_i32_3 = arith.constant 0 : i32
    return %c0_i32, %c0_i32_0, %c0_i32_1, %c0_i32_2 : i32, i32, i32, i32
  }
  func.func @transform_4(%arg0: i32) -> (i32, i32) {
    %c0_i32 = arith.constant 0 : i32
    %c0_i32_0 = arith.constant 0 : i32
    %c0_i32_1 = arith.constant 0 : i32
    return %c0_i32, %c0_i32_0 : i32, i32
  }
  func.func @transform_5(%arg0: i32) -> (i32, i32, i32) {
    %c0_i32 = arith.constant 0 : i32
    %c0_i32_0 = arith.constant 0 : i32
    %c0_i32_1 = arith.constant 0 : i32
    %c0_i32_2 = arith.constant 0 : i32
    return %c0_i32, %c0_i32_0, %c0_i32_1 : i32, i32, i32
  }
  func.func @transform_6(%arg0: i32) -> (i32, i32) {
    %c0_i32 = arith.constant 0 : i32
    %c0_i32_0 = arith.constant 0 : i32
    %c0_i32_1 = arith.constant 0 : i32
    return %c0_i32, %c0_i32_0 : i32, i32
  }
  func.func @transform_7(%arg0: i32) -> (i32, i32) {
    %c0_i32 = arith.constant 0 : i32
    %c0_i32_0 = arith.constant 0 : i32
    %c0_i32_1 = arith.constant 0 : i32
    return %c0_i32, %c0_i32_0 : i32, i32
  }
  func.func @transform_8(%arg0: i32) -> (i32, i32) {
    %c0_i32 = arith.constant 0 : i32
    %c0_i32_0 = arith.constant 0 : i32
    %c0_i32_1 = arith.constant 0 : i32
    return %c0_i32, %c0_i32_0 : i32, i32
  }
  func.func @transform_9(%arg0: i32) -> (i32, i32) {
    %c0_i32 = arith.constant 0 : i32
    %c0_i32_0 = arith.constant 0 : i32
    %c0_i32_1 = arith.constant 0 : i32
    return %c0_i32, %c0_i32_0 : i32, i32
  }
  func.func @transform_10(%arg0: i32) -> (i32, i32) {
    %c0_i32 = arith.constant 0 : i32
    %c0_i32_0 = arith.constant 0 : i32
    %c0_i32_1 = arith.constant 0 : i32
    return %c0_i32, %c0_i32_0 : i32, i32
  }
  func.func @transform_11(%arg0: i32) -> (i32, i32, i32) {
    %c0_i32 = arith.constant 0 : i32
    %c0_i32_0 = arith.constant 0 : i32
    %c0_i32_1 = arith.constant 0 : i32
    return %arg0, %c0_i32, %c0_i32_0 : i32, i32, i32
  }
}

module attributes {stable_mosaic.version = 11 : i64} {
  func.func @kernel(%arg0: i32, %arg1: memref<1x18x8xbf16, #tpu.memory_space<vmem>>, %arg2: memref<3x8x128xbf16, #tpu.memory_space<vmem>>, %arg3: memref<1x128xf32, #tpu.memory_space<vmem>>, %arg4: memref<2x3x64x64xbf16, #tpu.memory_space<vmem>>, %arg5: memref<1x128xf32, #tpu.memory_space<vmem>>, %arg6: memref<3x128x128xbf16, #tpu.memory_space<vmem>>, %arg7: memref<1x128xf32, #tpu.memory_space<vmem>>, %arg8: memref<128x128xbf16, #tpu.memory_space<vmem>>, %arg9: memref<1x128xf32, #tpu.memory_space<vmem>>, %arg10: memref<128x128xbf16, #tpu.memory_space<vmem>>, %arg11: memref<1x128xf32, #tpu.memory_space<vmem>>, %arg12: memref<1x1x128xf32, #tpu.memory_space<vmem>>, %arg13: memref<1x25x128xbf16, #tpu.memory_space<vmem>>) attributes {dimension_semantics = [#tpu.dimension_semantics<parallel>], iteration_bounds = array<i64: 2>, scalar_prefetch = 0 : i64, scratch_operands = 1 : i64, tpu.core_type = #tpu.core_type<tc>, window_params = [{transform_indices = @transform_0, window_bounds = array<i64: 1, 18, 8>}, {pipeline_mode = #tpu.pipeline_mode<synchronous>, transform_indices = @transform_1, window_bounds = array<i64: 3, 8, 128>}, {pipeline_mode = #tpu.pipeline_mode<synchronous>, transform_indices = @transform_2, window_bounds = array<i64: 1, 128>}, {pipeline_mode = #tpu.pipeline_mode<synchronous>, transform_indices = @transform_3, window_bounds = array<i64: 2, 3, 64, 64>}, {pipeline_mode = #tpu.pipeline_mode<synchronous>, transform_indices = @transform_4, window_bounds = array<i64: 1, 128>}, {pipeline_mode = #tpu.pipeline_mode<synchronous>, transform_indices = @transform_5, window_bounds = array<i64: 3, 128, 128>}, {pipeline_mode = #tpu.pipeline_mode<synchronous>, transform_indices = @transform_6, window_bounds = array<i64: 1, 128>}, {pipeline_mode = #tpu.pipeline_mode<synchronous>, transform_indices = @transform_7, window_bounds = array<i64: 128, 128>}, {pipeline_mode = #tpu.pipeline_mode<synchronous>, transform_indices = @transform_8, window_bounds = array<i64: 1, 128>}, {pipeline_mode = #tpu.pipeline_mode<synchronous>, transform_indices = @transform_9, window_bounds = array<i64: 128, 128>}, {pipeline_mode = #tpu.pipeline_mode<synchronous>, transform_indices = @transform_10, window_bounds = array<i64: 1, 128>}, {transform_indices = @transform_11, window_bounds = array<i64: 1, 1, 128>}]} {
    %cst = arith.constant 0.000000e+00 : bf16
    %0 = vector.broadcast %cst : bf16 to vector<1x8x128xbf16>
    %c0 = arith.constant 0 : index
    %c0_0 = arith.constant 0 : index
    %c0_1 = arith.constant 0 : index
    %1 = vector.load %arg13[%c0, %c0_0, %c0_1] : memref<1x25x128xbf16, #tpu.memory_space<vmem>>, vector<1x8x128xbf16>
    tpu.vector_store %arg13[%c0, %c0_0, %c0_1], %0 {strides = array<i32>} : memref<1x25x128xbf16, #tpu.memory_space<vmem>>, vector<1x8x128xbf16>,
    %cst_2 = arith.constant 0.000000e+00 : bf16
    %2 = vector.broadcast %cst_2 : bf16 to vector<1x1x128xbf16>
    %c0_3 = arith.constant 0 : index
    %c24 = arith.constant 24 : index
    %c0_4 = arith.constant 0 : index
    %3 = vector.load %arg13[%c0_3, %c24, %c0_4] : memref<1x25x128xbf16, #tpu.memory_space<vmem>>, vector<1x1x128xbf16>
    tpu.vector_store %arg13[%c0_3, %c24, %c0_4], %2 {strides = array<i32>} : memref<1x25x128xbf16, #tpu.memory_space<vmem>>, vector<1x1x128xbf16>,
    %cst_5 = arith.constant 0.000000e+00 : f32
    %4 = vector.broadcast %cst_5 : f32 to vector<16x128xf32>
    %c0_6 = arith.constant 0 : index
    %c0_7 = arith.constant 0 : index
    %c0_8 = arith.constant 0 : index
    %5 = vector.load %arg1[%c0_6, %c0_7, %c0_8] : memref<1x18x8xbf16, #tpu.memory_space<vmem>>, vector<1x16x8xbf16>
    %6 = vector.shape_cast %5 : vector<1x16x8xbf16> to vector<16x8xbf16>
    %c0_9 = arith.constant 0 : index
    %c0_10 = arith.constant 0 : index
    %c0_11 = arith.constant 0 : index
    %7 = vector.load %arg2[%c0_9, %c0_10, %c0_11] : memref<3x8x128xbf16, #tpu.memory_space<vmem>>, vector<1x8x128xbf16>
    %8 = vector.shape_cast %7 : vector<1x8x128xbf16> to vector<8x128xbf16>
    %cst_12 = arith.constant dense<0.000000e+00> : vector<16x128xf32>
    %9 = tpu.matmul %6, %8, %cst_12 {dimension_numbers = #tpu.dot_dimension_numbers<[1], [0], [0], [1], [0, 0, 1, 1], [], []>} : vector<16x8xbf16>, vector<8x128xbf16>, vector<16x128xf32> -> vector<16x128xf32>
    %10 = arith.addf %4, %9 : vector<16x128xf32>
    %c0_13 = arith.constant 0 : index
    %c1 = arith.constant 1 : index
    %c0_14 = arith.constant 0 : index
    %11 = vector.load %arg1[%c0_13, %c1, %c0_14] : memref<1x18x8xbf16, #tpu.memory_space<vmem>>, vector<1x16x8xbf16>
    %12 = vector.shape_cast %11 : vector<1x16x8xbf16> to vector<16x8xbf16>
    %c1_15 = arith.constant 1 : index
    %c0_16 = arith.constant 0 : index
    %c0_17 = arith.constant 0 : index
    %13 = vector.load %arg2[%c1_15, %c0_16, %c0_17] : memref<3x8x128xbf16, #tpu.memory_space<vmem>>, vector<1x8x128xbf16>
    %14 = vector.shape_cast %13 : vector<1x8x128xbf16> to vector<8x128xbf16>
    %cst_18 = arith.constant dense<0.000000e+00> : vector<16x128xf32>
    %15 = tpu.matmul %12, %14, %cst_18 {dimension_numbers = #tpu.dot_dimension_numbers<[1], [0], [0], [1], [0, 0, 1, 1], [], []>} : vector<16x8xbf16>, vector<8x128xbf16>, vector<16x128xf32> -> vector<16x128xf32>
    %16 = arith.addf %10, %15 : vector<16x128xf32>
    %c0_19 = arith.constant 0 : index
    %c2 = arith.constant 2 : index
    %c0_20 = arith.constant 0 : index
    %17 = vector.load %arg1[%c0_19, %c2, %c0_20] : memref<1x18x8xbf16, #tpu.memory_space<vmem>>, vector<1x16x8xbf16>
    %18 = vector.shape_cast %17 : vector<1x16x8xbf16> to vector<16x8xbf16>
    %c2_21 = arith.constant 2 : index
    %c0_22 = arith.constant 0 : index
    %c0_23 = arith.constant 0 : index
    %19 = vector.load %arg2[%c2_21, %c0_22, %c0_23] : memref<3x8x128xbf16, #tpu.memory_space<vmem>>, vector<1x8x128xbf16>
    %20 = vector.shape_cast %19 : vector<1x8x128xbf16> to vector<8x128xbf16>
    %cst_24 = arith.constant dense<0.000000e+00> : vector<16x128xf32>
    %21 = tpu.matmul %18, %20, %cst_24 {dimension_numbers = #tpu.dot_dimension_numbers<[1], [0], [0], [1], [0, 0, 1, 1], [], []>} : vector<16x8xbf16>, vector<8x128xbf16>, vector<16x128xf32> -> vector<16x128xf32>
    %22 = arith.addf %16, %21 : vector<16x128xf32>
    %c0_25 = arith.constant 0 : index
    %c0_26 = arith.constant 0 : index
    %23 = vector.load %arg3[%c0_25, %c0_26] : memref<1x128xf32, #tpu.memory_space<vmem>>, vector<1x128xf32>
    %24 = vector.broadcast %23 : vector<1x128xf32> to vector<16x128xf32>
    %25 = arith.addf %22, %24 : vector<16x128xf32>
    %26 = arith.truncf %25 : vector<16x128xf32> to vector<16x128xbf16>
    %27 = vector.shape_cast %26 : vector<16x128xbf16> to vector<1x16x128xbf16>
    %c0_27 = arith.constant 0 : index
    %c8 = arith.constant 8 : index
    %c0_28 = arith.constant 0 : index
    %28 = vector.load %arg13[%c0_27, %c8, %c0_28] : memref<1x25x128xbf16, #tpu.memory_space<vmem>>, vector<1x16x128xbf16>
    tpu.vector_store %arg13[%c0_27, %c8, %c0_28], %27 {strides = array<i32>} : memref<1x25x128xbf16, #tpu.memory_space<vmem>>, vector<1x16x128xbf16>,
    %cst_29 = arith.constant 0.000000e+00 : f32
    %29 = vector.broadcast %cst_29 : f32 to vector<16x64xf32>
    %cst_30 = arith.constant 0.000000e+00 : f32
    %30 = vector.broadcast %cst_30 : f32 to vector<16x64xf32>
    %c0_31 = arith.constant 0 : index
    %c7 = arith.constant 7 : index
    %c0_32 = arith.constant 0 : index
    %31 = vector.load %arg13[%c0_31, %c7, %c0_32] : memref<1x25x128xbf16, #tpu.memory_space<vmem>>, vector<1x16x128xbf16>
    %32 = vector.shape_cast %31 : vector<1x16x128xbf16> to vector<16x128xbf16>
    %33 = vector.extract_strided_slice %32 {offsets = [0, 0], sizes = [16, 64], strides = [1, 1]} : vector<16x128xbf16> to vector<16x64xbf16>
    %c0_33 = arith.constant 0 : index
    %c0_34 = arith.constant 0 : index
    %c0_35 = arith.constant 0 : index
    %c0_36 = arith.constant 0 : index
    %34 = vector.load %arg4[%c0_33, %c0_34, %c0_35, %c0_36] : memref<2x3x64x64xbf16, #tpu.memory_space<vmem>>, vector<1x1x64x64xbf16>
    %35 = vector.shape_cast %34 : vector<1x1x64x64xbf16> to vector<64x64xbf16>
    %cst_37 = arith.constant dense<0.000000e+00> : vector<16x64xf32>
    %36 = tpu.matmul %33, %35, %cst_37 {dimension_numbers = #tpu.dot_dimension_numbers<[1], [0], [0], [1], [0, 0, 1, 1], [], []>} : vector<16x64xbf16>, vector<64x64xbf16>, vector<16x64xf32> -> vector<16x64xf32>
    %37 = arith.addf %29, %36 : vector<16x64xf32>
    %38 = vector.extract_strided_slice %32 {offsets = [0, 64], sizes = [16, 64], strides = [1, 1]} : vector<16x128xbf16> to vector<16x64xbf16>
    %c1_38 = arith.constant 1 : index
    %c0_39 = arith.constant 0 : index
    %c0_40 = arith.constant 0 : index
    %c0_41 = arith.constant 0 : index
    %39 = vector.load %arg4[%c1_38, %c0_39, %c0_40, %c0_41] : memref<2x3x64x64xbf16, #tpu.memory_space<vmem>>, vector<1x1x64x64xbf16>
    %40 = vector.shape_cast %39 : vector<1x1x64x64xbf16> to vector<64x64xbf16>
    %cst_42 = arith.constant dense<0.000000e+00> : vector<16x64xf32>
    %41 = tpu.matmul %38, %40, %cst_42 {dimension_numbers = #tpu.dot_dimension_numbers<[1], [0], [0], [1], [0, 0, 1, 1], [], []>} : vector<16x64xbf16>, vector<64x64xbf16>, vector<16x64xf32> -> vector<16x64xf32>
    %42 = arith.addf %30, %41 : vector<16x64xf32>
    %c0_43 = arith.constant 0 : index
    %c8_44 = arith.constant 8 : index
    %c0_45 = arith.constant 0 : index
    %43 = vector.load %arg13[%c0_43, %c8_44, %c0_45] : memref<1x25x128xbf16, #tpu.memory_space<vmem>>, vector<1x16x128xbf16>
    %44 = vector.shape_cast %43 : vector<1x16x128xbf16> to vector<16x128xbf16>
    %45 = vector.extract_strided_slice %44 {offsets = [0, 0], sizes = [16, 64], strides = [1, 1]} : vector<16x128xbf16> to vector<16x64xbf16>
    %c0_46 = arith.constant 0 : index
    %c1_47 = arith.constant 1 : index
    %c0_48 = arith.constant 0 : index
    %c0_49 = arith.constant 0 : index
    %46 = vector.load %arg4[%c0_46, %c1_47, %c0_48, %c0_49] : memref<2x3x64x64xbf16, #tpu.memory_space<vmem>>, vector<1x1x64x64xbf16>
    %47 = vector.shape_cast %46 : vector<1x1x64x64xbf16> to vector<64x64xbf16>
    %cst_50 = arith.constant dense<0.000000e+00> : vector<16x64xf32>
    %48 = tpu.matmul %45, %47, %cst_50 {dimension_numbers = #tpu.dot_dimension_numbers<[1], [0], [0], [1], [0, 0, 1, 1], [], []>} : vector<16x64xbf16>, vector<64x64xbf16>, vector<16x64xf32> -> vector<16x64xf32>
    %49 = arith.addf %37, %48 : vector<16x64xf32>
    %50 = vector.extract_strided_slice %44 {offsets = [0, 64], sizes = [16, 64], strides = [1, 1]} : vector<16x128xbf16> to vector<16x64xbf16>
    %c1_51 = arith.constant 1 : index
    %c1_52 = arith.constant 1 : index
    %c0_53 = arith.constant 0 : index
    %c0_54 = arith.constant 0 : index
    %51 = vector.load %arg4[%c1_51, %c1_52, %c0_53, %c0_54] : memref<2x3x64x64xbf16, #tpu.memory_space<vmem>>, vector<1x1x64x64xbf16>
    %52 = vector.shape_cast %51 : vector<1x1x64x64xbf16> to vector<64x64xbf16>
    %cst_55 = arith.constant dense<0.000000e+00> : vector<16x64xf32>
    %53 = tpu.matmul %50, %52, %cst_55 {dimension_numbers = #tpu.dot_dimension_numbers<[1], [0], [0], [1], [0, 0, 1, 1], [], []>} : vector<16x64xbf16>, vector<64x64xbf16>, vector<16x64xf32> -> vector<16x64xf32>
    %54 = arith.addf %42, %53 : vector<16x64xf32>
    %c0_56 = arith.constant 0 : index
    %c9 = arith.constant 9 : index
    %c0_57 = arith.constant 0 : index
    %55 = vector.load %arg13[%c0_56, %c9, %c0_57] : memref<1x25x128xbf16, #tpu.memory_space<vmem>>, vector<1x16x128xbf16>
    %56 = vector.shape_cast %55 : vector<1x16x128xbf16> to vector<16x128xbf16>
    %57 = vector.extract_strided_slice %56 {offsets = [0, 0], sizes = [16, 64], strides = [1, 1]} : vector<16x128xbf16> to vector<16x64xbf16>
    %c0_58 = arith.constant 0 : index
    %c2_59 = arith.constant 2 : index
    %c0_60 = arith.constant 0 : index
    %c0_61 = arith.constant 0 : index
    %58 = vector.load %arg4[%c0_58, %c2_59, %c0_60, %c0_61] : memref<2x3x64x64xbf16, #tpu.memory_space<vmem>>, vector<1x1x64x64xbf16>
    %59 = vector.shape_cast %58 : vector<1x1x64x64xbf16> to vector<64x64xbf16>
    %cst_62 = arith.constant dense<0.000000e+00> : vector<16x64xf32>
    %60 = tpu.matmul %57, %59, %cst_62 {dimension_numbers = #tpu.dot_dimension_numbers<[1], [0], [0], [1], [0, 0, 1, 1], [], []>} : vector<16x64xbf16>, vector<64x64xbf16>, vector<16x64xf32> -> vector<16x64xf32>
    %61 = arith.addf %49, %60 : vector<16x64xf32>
    %62 = vector.extract_strided_slice %56 {offsets = [0, 64], sizes = [16, 64], strides = [1, 1]} : vector<16x128xbf16> to vector<16x64xbf16>
    %c1_63 = arith.constant 1 : index
    %c2_64 = arith.constant 2 : index
    %c0_65 = arith.constant 0 : index
    %c0_66 = arith.constant 0 : index
    %63 = vector.load %arg4[%c1_63, %c2_64, %c0_65, %c0_66] : memref<2x3x64x64xbf16, #tpu.memory_space<vmem>>, vector<1x1x64x64xbf16>
    %64 = vector.shape_cast %63 : vector<1x1x64x64xbf16> to vector<64x64xbf16>
    %cst_67 = arith.constant dense<0.000000e+00> : vector<16x64xf32>
    %65 = tpu.matmul %62, %64, %cst_67 {dimension_numbers = #tpu.dot_dimension_numbers<[1], [0], [0], [1], [0, 0, 1, 1], [], []>} : vector<16x64xbf16>, vector<64x64xbf16>, vector<16x64xf32> -> vector<16x64xf32>
    %66 = arith.addf %54, %65 : vector<16x64xf32>
    %67 = tpu.concatenate %61, %66 in 1 : vector<16x64xf32>, vector<16x64xf32> -> vector<16x128xf32>
    %c0_68 = arith.constant 0 : index
    %c0_69 = arith.constant 0 : index
    %68 = vector.load %arg5[%c0_68, %c0_69] : memref<1x128xf32, #tpu.memory_space<vmem>>, vector<1x128xf32>
    %69 = vector.broadcast %68 : vector<1x128xf32> to vector<16x128xf32>
    %70 = arith.addf %67, %69 : vector<16x128xf32>
    %cst_70 = arith.constant 0.000000e+00 : f32
    %71 = vector.broadcast %cst_70 : f32 to vector<16x128xf32>
    %72 = arith.cmpf ogt, %70, %71 : vector<16x128xf32>
    %cst_71 = arith.constant 0.00999999977 : f32
    %73 = vector.broadcast %cst_71 : f32 to vector<16x128xf32>
    %74 = arith.mulf %73, %70 : vector<16x128xf32>
    %75 = arith.select %72, %70, %74 : vector<16x128xi1>, vector<16x128xf32>
    %76 = arith.truncf %75 : vector<16x128xf32> to vector<16x128xbf16>
    %77 = vector.shape_cast %76 : vector<16x128xbf16> to vector<1x16x128xbf16>
    %c0_72 = arith.constant 0 : index
    %c8_73 = arith.constant 8 : index
    %c0_74 = arith.constant 0 : index
    %78 = vector.load %arg13[%c0_72, %c8_73, %c0_74] : memref<1x25x128xbf16, #tpu.memory_space<vmem>>, vector<1x16x128xbf16>
    tpu.vector_store %arg13[%c0_72, %c8_73, %c0_74], %77 {strides = array<i32>} : memref<1x25x128xbf16, #tpu.memory_space<vmem>>, vector<1x16x128xbf16>,
    %cst_75 = arith.constant 0.000000e+00 : f32
    %79 = vector.broadcast %cst_75 : f32 to vector<16x128xf32>
    %c0_76 = arith.constant 0 : index
    %c7_77 = arith.constant 7 : index
    %c0_78 = arith.constant 0 : index
    %80 = vector.load %arg13[%c0_76, %c7_77, %c0_78] : memref<1x25x128xbf16, #tpu.memory_space<vmem>>, vector<1x16x128xbf16>
    %81 = vector.shape_cast %80 : vector<1x16x128xbf16> to vector<16x128xbf16>
    %c0_79 = arith.constant 0 : index
    %c0_80 = arith.constant 0 : index
    %c0_81 = arith.constant 0 : index
    %82 = vector.load %arg6[%c0_79, %c0_80, %c0_81] : memref<3x128x128xbf16, #tpu.memory_space<vmem>>, vector<1x128x128xbf16>
    %83 = vector.shape_cast %82 : vector<1x128x128xbf16> to vector<128x128xbf16>
    %cst_82 = arith.constant dense<0.000000e+00> : vector<16x128xf32>
    %84 = tpu.matmul %81, %83, %cst_82 {dimension_numbers = #tpu.dot_dimension_numbers<[1], [0], [0], [1], [0, 0, 1, 1], [], []>} : vector<16x128xbf16>, vector<128x128xbf16>, vector<16x128xf32> -> vector<16x128xf32>
    %85 = arith.addf %79, %84 : vector<16x128xf32>
    %c0_83 = arith.constant 0 : index
    %c8_84 = arith.constant 8 : index
    %c0_85 = arith.constant 0 : index
    %86 = vector.load %arg13[%c0_83, %c8_84, %c0_85] : memref<1x25x128xbf16, #tpu.memory_space<vmem>>, vector<1x16x128xbf16>
    %87 = vector.shape_cast %86 : vector<1x16x128xbf16> to vector<16x128xbf16>
    %c1_86 = arith.constant 1 : index
    %c0_87 = arith.constant 0 : index
    %c0_88 = arith.constant 0 : index
    %88 = vector.load %arg6[%c1_86, %c0_87, %c0_88] : memref<3x128x128xbf16, #tpu.memory_space<vmem>>, vector<1x128x128xbf16>
    %89 = vector.shape_cast %88 : vector<1x128x128xbf16> to vector<128x128xbf16>
    %cst_89 = arith.constant dense<0.000000e+00> : vector<16x128xf32>
    %90 = tpu.matmul %87, %89, %cst_89 {dimension_numbers = #tpu.dot_dimension_numbers<[1], [0], [0], [1], [0, 0, 1, 1], [], []>} : vector<16x128xbf16>, vector<128x128xbf16>, vector<16x128xf32> -> vector<16x128xf32>
    %91 = arith.addf %85, %90 : vector<16x128xf32>
    %c0_90 = arith.constant 0 : index
    %c9_91 = arith.constant 9 : index
    %c0_92 = arith.constant 0 : index
    %92 = vector.load %arg13[%c0_90, %c9_91, %c0_92] : memref<1x25x128xbf16, #tpu.memory_space<vmem>>, vector<1x16x128xbf16>
    %93 = vector.shape_cast %92 : vector<1x16x128xbf16> to vector<16x128xbf16>
    %c2_93 = arith.constant 2 : index
    %c0_94 = arith.constant 0 : index
    %c0_95 = arith.constant 0 : index
    %94 = vector.load %arg6[%c2_93, %c0_94, %c0_95] : memref<3x128x128xbf16, #tpu.memory_space<vmem>>, vector<1x128x128xbf16>
    %95 = vector.shape_cast %94 : vector<1x128x128xbf16> to vector<128x128xbf16>
    %cst_96 = arith.constant dense<0.000000e+00> : vector<16x128xf32>
    %96 = tpu.matmul %93, %95, %cst_96 {dimension_numbers = #tpu.dot_dimension_numbers<[1], [0], [0], [1], [0, 0, 1, 1], [], []>} : vector<16x128xbf16>, vector<128x128xbf16>, vector<16x128xf32> -> vector<16x128xf32>
    %97 = arith.addf %91, %96 : vector<16x128xf32>
    %c0_97 = arith.constant 0 : index
    %c0_98 = arith.constant 0 : index
    %98 = vector.load %arg7[%c0_97, %c0_98] : memref<1x128xf32, #tpu.memory_space<vmem>>, vector<1x128xf32>
    %99 = vector.broadcast %98 : vector<1x128xf32> to vector<16x128xf32>
    %100 = arith.addf %97, %99 : vector<16x128xf32>
    %cst_99 = arith.constant dense<0.000000e+00> : vector<128xf32>
    %101 = vector.multi_reduction <add>, %100, %cst_99 [0] : vector<16x128xf32> to vector<128xf32>
    %102 = vector.shape_cast %101 : vector<128xf32> to vector<1x128xf32>
    %cst_100 = arith.constant 6.250000e-02 : f32
    %103 = vector.broadcast %cst_100 : f32 to vector<1x128xf32>
    %104 = arith.mulf %102, %103 : vector<1x128xf32>
    %105 = arith.truncf %104 : vector<1x128xf32> to vector<1x128xbf16>
    %c0_101 = arith.constant 0 : index
    %c0_102 = arith.constant 0 : index
    %106 = vector.load %arg8[%c0_101, %c0_102] : memref<128x128xbf16, #tpu.memory_space<vmem>>, vector<128x128xbf16>
    %cst_103 = arith.constant dense<0.000000e+00> : vector<1x128xf32>
    %107 = tpu.matmul %105, %106, %cst_103 {dimension_numbers = #tpu.dot_dimension_numbers<[1], [0], [0], [1], [0, 0, 1, 1], [], []>} : vector<1x128xbf16>, vector<128x128xbf16>, vector<1x128xf32> -> vector<1x128xf32>
    %c0_104 = arith.constant 0 : index
    %c0_105 = arith.constant 0 : index
    %108 = vector.load %arg9[%c0_104, %c0_105] : memref<1x128xf32, #tpu.memory_space<vmem>>, vector<1x128xf32>
    %109 = arith.addf %107, %108 : vector<1x128xf32>
    %cst_106 = arith.constant 0.000000e+00 : f32
    %110 = vector.broadcast %cst_106 : f32 to vector<1x128xf32>
    %111 = arith.cmpf ogt, %109, %110 : vector<1x128xf32>
    %cst_107 = arith.constant 0.00999999977 : f32
    %112 = vector.broadcast %cst_107 : f32 to vector<1x128xf32>
    %113 = arith.mulf %112, %109 : vector<1x128xf32>
    %114 = arith.select %111, %109, %113 : vector<1x128xi1>, vector<1x128xf32>
    %115 = arith.truncf %114 : vector<1x128xf32> to vector<1x128xbf16>
    %c0_108 = arith.constant 0 : index
    %c0_109 = arith.constant 0 : index
    %116 = vector.load %arg10[%c0_108, %c0_109] : memref<128x128xbf16, #tpu.memory_space<vmem>>, vector<128x128xbf16>
    %cst_110 = arith.constant dense<0.000000e+00> : vector<1x128xf32>
    %117 = tpu.matmul %115, %116, %cst_110 {dimension_numbers = #tpu.dot_dimension_numbers<[1], [0], [0], [1], [0, 0, 1, 1], [], []>} : vector<1x128xbf16>, vector<128x128xbf16>, vector<1x128xf32> -> vector<1x128xf32>
    %c0_111 = arith.constant 0 : index
    %c0_112 = arith.constant 0 : index
    %118 = vector.load %arg11[%c0_111, %c0_112] : memref<1x128xf32, #tpu.memory_space<vmem>>, vector<1x128xf32>
    %119 = arith.addf %117, %118 : vector<1x128xf32>
    %c0_113 = arith.constant 0 : index
    %c0_114 = arith.constant 0 : index
    %c0_115 = arith.constant 0 : index
    %120 = vector.load %arg12[%c0_113, %c0_114, %c0_115] : memref<1x1x128xf32, #tpu.memory_space<vmem>>, vector<1x1x128xf32>
    %121 = vector.shape_cast %120 : vector<1x1x128xf32> to vector<1x128xf32>
    %122 = vector.shape_cast %119 : vector<1x128xf32> to vector<1x1x128xf32>
    tpu.vector_store %arg12[%c0_113, %c0_114, %c0_115], %122 {strides = array<i32>} : memref<1x1x128xf32, #tpu.memory_space<vmem>>, vector<1x1x128xf32>,
    return
  }
  func.func @transform_0(%arg0: i32) -> (i32, i32, i32) {
    %c0_i32 = arith.constant 0 : i32
    %c0_i32_0 = arith.constant 0 : i32
    %c0_i32_1 = arith.constant 0 : i32
    return %arg0, %c0_i32, %c0_i32_0 : i32, i32, i32
  }
  func.func @transform_1(%arg0: i32) -> (i32, i32, i32) {
    %c0_i32 = arith.constant 0 : i32
    %c0_i32_0 = arith.constant 0 : i32
    %c0_i32_1 = arith.constant 0 : i32
    %c0_i32_2 = arith.constant 0 : i32
    return %c0_i32, %c0_i32_0, %c0_i32_1 : i32, i32, i32
  }
  func.func @transform_2(%arg0: i32) -> (i32, i32) {
    %c0_i32 = arith.constant 0 : i32
    %c0_i32_0 = arith.constant 0 : i32
    %c0_i32_1 = arith.constant 0 : i32
    return %c0_i32, %c0_i32_0 : i32, i32
  }
  func.func @transform_3(%arg0: i32) -> (i32, i32, i32, i32) {
    %c0_i32 = arith.constant 0 : i32
    %c0_i32_0 = arith.constant 0 : i32
    %c0_i32_1 = arith.constant 0 : i32
    %c0_i32_2 = arith.constant 0 : i32
    %c0_i32_3 = arith.constant 0 : i32
    return %c0_i32, %c0_i32_0, %c0_i32_1, %c0_i32_2 : i32, i32, i32, i32
  }
  func.func @transform_4(%arg0: i32) -> (i32, i32) {
    %c0_i32 = arith.constant 0 : i32
    %c0_i32_0 = arith.constant 0 : i32
    %c0_i32_1 = arith.constant 0 : i32
    return %c0_i32, %c0_i32_0 : i32, i32
  }
  func.func @transform_5(%arg0: i32) -> (i32, i32, i32) {
    %c0_i32 = arith.constant 0 : i32
    %c0_i32_0 = arith.constant 0 : i32
    %c0_i32_1 = arith.constant 0 : i32
    %c0_i32_2 = arith.constant 0 : i32
    return %c0_i32, %c0_i32_0, %c0_i32_1 : i32, i32, i32
  }
  func.func @transform_6(%arg0: i32) -> (i32, i32) {
    %c0_i32 = arith.constant 0 : i32
    %c0_i32_0 = arith.constant 0 : i32
    %c0_i32_1 = arith.constant 0 : i32
    return %c0_i32, %c0_i32_0 : i32, i32
  }
  func.func @transform_7(%arg0: i32) -> (i32, i32) {
    %c0_i32 = arith.constant 0 : i32
    %c0_i32_0 = arith.constant 0 : i32
    %c0_i32_1 = arith.constant 0 : i32
    return %c0_i32, %c0_i32_0 : i32, i32
  }
  func.func @transform_8(%arg0: i32) -> (i32, i32) {
    %c0_i32 = arith.constant 0 : i32
    %c0_i32_0 = arith.constant 0 : i32
    %c0_i32_1 = arith.constant 0 : i32
    return %c0_i32, %c0_i32_0 : i32, i32
  }
  func.func @transform_9(%arg0: i32) -> (i32, i32) {
    %c0_i32 = arith.constant 0 : i32
    %c0_i32_0 = arith.constant 0 : i32
    %c0_i32_1 = arith.constant 0 : i32
    return %c0_i32, %c0_i32_0 : i32, i32
  }
  func.func @transform_10(%arg0: i32) -> (i32, i32) {
    %c0_i32 = arith.constant 0 : i32
    %c0_i32_0 = arith.constant 0 : i32
    %c0_i32_1 = arith.constant 0 : i32
    return %c0_i32, %c0_i32_0 : i32, i32
  }
  func.func @transform_11(%arg0: i32) -> (i32, i32, i32) {
    %c0_i32 = arith.constant 0 : i32
    %c0_i32_0 = arith.constant 0 : i32
    %c0_i32_1 = arith.constant 0 : i32
    return %arg0, %c0_i32, %c0_i32_0 : i32, i32, i32
  }
}

</mosaic_0001>

<bundles_post_ra>
// kernel: tpu_custom_call.1
= control target key start
LH: loop header
LB: loop body
LE: loop exit
PB: predicated region body
PF: predicated region fallthrough
CT: control target
= control target key end

     0   :  { %s2444_s0 = inlined_call_operand.vmem [shape: bf16[2,18,8], index: 0, kind: input, shape index: {}]   ;;  %s2445_s1 = inlined_call_operand.vmem [shape: bf16[3,8,128], index: 1, kind: input, shape index: {}]   ;;  %s2446_s2 = inlined_call_operand.vmem [shape: f32[1,128], index: 2, kind: input, shape index: {}]   ;;  %s2447_s3 = inlined_call_operand.hbm [shape: bf16[2,3,64,64], index: 3, kind: input, shape index: {}]   ;;  %s2448_s4 = inlined_call_operand.vmem [shape: f32[1,128], index: 4, kind: input, shape index: {}]   ;;  %s2449_s5 = inlined_call_operand.hbm [shape: bf16[3,128,128], index: 5, kind: input, shape index: {}]   ;;  %s2450_s6 = inlined_call_operand.vmem [shape: f32[1,128], index: 6, kind: input, shape index: {}]   ;;  %s2451_s7 = inlined_call_operand.hbm [shape: bf16[128,128], index: 7, kind: input, shape index: {}]   ;;  %s2452_s8 = inlined_call_operand.vmem [shape: f32[1,128], index: 8, kind: input, shape index: {}]   ;;  %s2453_s9 = inlined_call_operand.hbm [shape: bf16[128,128], index: 9, kind: input, shape index: {}]   ;;  %s2454_s10 = inlined_call_operand.vmem [shape: f32[1,128], index: 10, kind: input, shape index: {}]   ;;  %s2455_s11 = inlined_call_operand.hbm [shape: f32[2,1,128], index: 11, kind: output, shape index: {}]  }
   0x1   :  { %2461 = sst [smem:[#allocation21_spill]] %s2447_s3 }
   0x2   :  { %2462 = sst [smem:[#allocation22_spill]] %s2449_s5 }
   0x3   :  { %16 = vsyncpa [#allocation4], 0 }
   0x4   :  { %17 = vsyncpa [#allocation7], 0 }
   0x5   :  { %18 = vsyncpa [#allocation10], 0 }
   0x6   :  { %19 = vsyncpa [#allocation5], 0 }
   0x7   :  { %21 = vsyncpa [#allocation5 + $0x1], 0  ;;  %s2261_s17 = smov 0   ;;  %s2263_s18 = smov 0  }
   0x8   :  { %s2265_s19 = smov 0   ;;  %s2267_s20 = smov 0  }
   0x9 LB: > { %2463 = sst [smem:[#allocation16_spill]] %s2179_s17  ;;  %s2282_s21 = sadd.s32 4294967295, %s2191_s20   ;;  %s2191_s20 = sphi %s2267_s20, %s2476_s20   ;;  %s2187_s19 = sphi %s2265_s19, %s2478_s19   ;;  %s2183_s18 = sphi %s2263_s18, %s2480_s18   ;;  %s2179_s17 = sphi %s2261_s17, %s2479_s17  }
   0xa   : > { %2464 = sst [smem:[#allocation17_spill]] %s2187_s19  ;;  %s1536_s22 = sadd.s32 4294967294, %s2191_s20  }
   0xb   : > { %s2286_s23 = sadd.s32 1, %s2191_s20   ;;  %s270_s24 = sadd.s32 1, %s2187_s19 }
   0xc   : > { %2465 = sst [smem:[#allocation18_spill]] %s2286_s23  ;;  %s267_s25 = ssub.s32 %s2191_s20, %s2286_s23 }
   0xd   : > { %p280_p0 = scmp.ne.s32.totalorder %s2187_s19, %s2183_s18  ;;  %p268_p1 = scmp.eq.s32.totalorder %s267_s25, 0 }
   0xe   : > { %p281_p2 = scmp.eq.s32.totalorder %s2282_s21, 1  ;;  %p286_p3 = scmp.ne.s32.totalorder %s2183_s18, %s2179_s17 }
   0xf   : > { %p287_p4 = scmp.eq.s32.totalorder %s1536_s22, 1  ;;  %p1537_p7 = scmp.ge.s32.totalorder %s2191_s20, 1 }
  0x10   : > { %s2297_s26 = scalar_select %p268_p1, %s2187_s19, %s270_s24  }
  0x11   : > { %p2299_p5 = por %p281_p2, %p280_p0  ;;  %p2303_p6 = por %p287_p4, %p286_p3 }
  0x12   : > { %2466 = sst [smem:[#allocation19_spill]] %s2297_s26  ;;  %p294_p8 = scmp.lt.s32.totalorder %s2191_s20, 3 }
  0x13   : > { %s2468_s28 = scalar_select %p2303_p6, 1, 0 }
  0x14   : > { %p1935_p9 = scmp.eq.s32.totalorder %s2282_s21, 0  ;;  %p2310_p10 = pnand %p1537_p7, %p294_p8 }
  0x15   : > { %2469 = sst [smem:[#allocation20_spill]] %s2468_s28  ;;  %s2193_s24 = smov [#allocation6]  }
  0x16   : > { %s2471_s5 = sld [smem:[#allocation22_spill]]  ;;  %p1918_p11 = pneg %p2310_p10 }
  0x17   : > { %s2472_s3 = sld [smem:[#allocation21_spill]]  ;;  %s330_s25 = sshll.u32 %s2193_s24, 4  ;;  %s331_s25 = int_to_ptr.vmem [resolvable:$true] %s330_s25 }
  0x18   : > { %p2324_p12 = pnand %p1935_p9, %p1918_p11  ;;  %s2194_s30 = smov 64  }
  0x19   : > { %s2195_s12 = smov 4   ;;  %s345_s26 = sshll.u32 %s2451_s7, 4  ;;  %s346_s26 = int_to_ptr.hbm [resolvable:$true] %s345_s26 }
  0x1a   : > { %s362_s23 = sshll.u32 %s2453_s9, 4  ;;  %s2197_s28 = smov [#allocation8]   ;;  %s363_s23 = int_to_ptr.hbm [resolvable:$true] %s362_s23 }
  0x1b   : > { %s347_s17 = sshll.u32 %s2197_s28, 4  ;;  %s348_s17 = int_to_ptr.vmem [resolvable:$true] %s347_s17 }
  0x1c   : > { %s328_s13 = sshll.u32 %s2471_s5, 4  ;;  %s2196_s5 = smov [#allocation3]   ;;  %s329_s13 = int_to_ptr.hbm [resolvable:$true] %s328_s13 }
  0x1d   : > { %s311_s16 = sshll.u32 %s2472_s3, 4  ;;  %s313_s14 = sshll.u32 %s2196_s5, 4  ;;  %s312_s16 = int_to_ptr.hbm [resolvable:$true] %s311_s16  ;;  %s314_s14 = int_to_ptr.vmem [resolvable:$true] %s313_s14 }
  0x1e   : > { %1924 = dma.hbm_to_vmem [thread:$0]  (!%p2324_p12), %s329_s13, 3072, %s331_s25, [#allocation7], %s2194_s30, %s2194_s30, %s2195_s12  }
  0x1f   : > { %1921 = dma.hbm_to_vmem [thread:$0]  (!%p2324_p12), %s312_s16, 3072, %s314_s14, [#allocation4], %s2194_s30, %s2194_s30, %s2195_s12  }
  0x20   : > { %1927 = dma.hbm_to_vmem [thread:$0]  (!%p2324_p12), %s346_s26, 1024, %s348_s17, [#allocation7], %s2194_s30, %s2194_s30, %s2195_s12  }
  0x21   : > { %s2198_s13 = smov [#allocation9]   ;;  %391 = sbr.rel (%p2310_p10) target bundleno = 1052 (0x41c), region = 64 }
  0x22   : > { %s364_s5 = sshll.u32 %s2198_s13, 4  ;;  %s365_s5 = int_to_ptr.vmem [resolvable:$true] %s364_s5 }
  0x23   : > { %1930 = dma.hbm_to_vmem [thread:$0]  (!%p2324_p12), %s363_s23, 1024, %s365_s5, [#allocation10], %s2194_s30, %s2194_s30, %s2195_s12  }
  0x26   : > { %2160 = dma.done.wait (%p1935_p9), [#allocation4], 3072  }
  0x27   : > { %2162 = vsyncadd (%p1935_p9), [#allocation4], 4294964224 }
  0x28   : > { %2164 = dma.done.wait (%p1935_p9), [#allocation7], 4096  }
  0x29   : > { %2166 = vsyncadd (%p1935_p9), [#allocation7], 4294963200 }
  0x2a   : > { %2168 = dma.done.wait (%p1935_p9), [#allocation10], 1024  }
  0x2b   : > { %2170 = vsyncadd (%p1935_p9), [#allocation10], 4294966272  ;;  %p446_p13 = scmp.lt.s32.totalorder %s2282_s21, 1  ;;  %vm490_vm0 = vcmask 1043456   ;;  %v461_v0 = vld [vmem:[%s2445_s1] sm:$0xf]  ;;  %s1436_s29 = scalar_lea.hbm %s2455_s11, %s2282_s21 }
  0x2c   : > { %v1552_v2 = vld [vmem:[%s2445_s1 + $0x8] sm:$0xf]  ;;  %v511_v3 = vsel %vm490_vm0, %v461_v0, 0  ;;  %v1549_v6 = vld [vmem:[%s2445_s1 + $0x4] sm:$0xf]  ;;  %vm486_vm1 = vcmask 64512  }
  0x2d   : > { %s447_s3 = scalar_select %p446_p13, %s2282_s21, 1  ;;  %v541_v5 = vsel %vm490_vm0, %v1552_v2, 0  ;;  %520 = vmatpush.bf16.msra.mxu1 %v511_v3  ;;  %v492_v7 = vsel %vm490_vm0, %v1549_v6, 0  ;;  %vm533_vm2 = vcmask 1046528   ;;  %vm473_vm3 = vsmask.f32 7424 }
  0x2e   : > { %550 = vmatpush.bf16.msra.mxu2 %v541_v5  ;;  %501 = vmatpush.bf16.msra.mxu0 %v492_v7  ;;  %v1837_v23 = vld [vmem:[#allocation3 + $0x38] sm:$0xff]  ;;  %vm453_vm4 = vcmask 1040384   ;;  %vm454_vm5 = vsmask.f32 256  ;;  %v1836_v26 = vld [vmem:[#allocation3 + $0x30] sm:$0xff]  ;;  %v2199_v28 = vmov 0  }
  0x2f   : > { %s1899_s17 = smul.u32 12, %s447_s3  ;;  %635 = vmatpush.bf16.msra.mxu3 %v1837_v23  ;;  %vm455_vm6 = vmand %vm453_vm4, %vm454_vm5  ;;  %v456_v24 = vld [vmem:[#allocation2 + $0xc] sm:$0x1]  ;;  %452 = vst [vmem:[#allocation2] sm:$0xf] %v2199_v28  ;;  %v1835_v29 = vld [vmem:[#allocation3 + $0x28] sm:$0xff] }
  0x30   : > { %v457_v25 = vsel %vm455_vm6, 0, %v456_v24  ;;  %v1829_v27 = vld [vmem:[#allocation3 + $0x18] sm:$0xff]  ;;  %v1828_v30 = vld [vmem:[#allocation3 + $0x10] sm:$0xff]  ;;  %v1834_v31 = vld [vmem:[#allocation3 + $0x20] sm:$0xff]  ;;  %vm627_vm7 = vcmask 523264   ;;  %s2200_s15 = smov 64  }
  0x31   : > { %s450_s26 = scalar_lea.vmem %s2444_s0, %s1899_s17  ;;  %458 = vst [vmem:[#allocation2 + $0xc] sm:$0x1] %v457_v25  ;;  %v1827_v32 = vld [vmem:[#allocation3 + $0x8] sm:$0xff]  ;;  %v1846_v33 = vld [vmem:[#allocation3 + $0x58] sm:$0xff]  ;;  %v1826_v37 = vld [vmem:[#allocation3] sm:$0xff]  ;;  %s444_s23 = sand.u32 1, %s2183_s18  }
  0x32   : > { %v1893_v1 = vld [vmem:[%s450_s26] sm:$0xff]   ;;  %v462_v9 = vld [vmem:[%s450_s26 + $0x8] sm:$0x1]  ;;  %698 = vmatpush.bf16.msrb.mxu0 %v1829_v27  ;;  %v1844_v42 = vld [vmem:[#allocation3 + $0x48] sm:$0xff]  ;;  %vm649_vm8 = vsmask.f32 4352 }
  0x33   : > { %v477_v4 = vshll.u32 %v1893_v1, 16  ;;  %v1896_v8 = vld [vmem:[%s450_s26] sm:$0xf0]  ;;  %v475_v10 = vshrl.u32 %v1893_v1, 16  ;;  %v470_v12 = vunpack.c.l.b16 %v462_v9  ;;  %v1897_v13 = vld [vmem:[%s450_s26] sm:$0xe]  ;;  %1551 = vmatmul.msk.bf16.vlgmr.msra.gmra.mxu1 %vm486_vm1, %v1893_v1  ;;  %636 = vmatpush.bf16.msra.mxu3 %v1836_v26 }
  0x34   : > { %v1898_v14 = vor.u32 %v1897_v13, %v1896_v8  ;;  %v1845_v38 = vld [vmem:[#allocation3 + $0x50] sm:$0xff]  ;;  %v1843_v45 = vld [vmem:[#allocation3 + $0x40] sm:$0xff]  ;;  %v1841_v53 = vld [vmem:[#allocation3 + $0x98] sm:$0xff]  ;;  %s445_s25 = scalar_lea.vmem [#allocation11], %s444_s23  ;;  %s1440_s12 = sshll.u32 %s1436_s29, 4  ;;  %s1441_s12 = int_to_ptr.hbm [resolvable:$true] %s1440_s12 }
  0x35   : > { %v479_v11 = vrot.slane %v477_v4, 1  ;;  %v472_v15 = vpack.c.b16 %v470_v12, %v470_v12  ;;  %v1984_v39 = vld [vmem:[%s2446_s2] ss:$0 sm:$0xff]  ;;  %v1850_v54 = vld [vmem:[#allocation3 + $0xb8] sm:$0xff]  ;;  %750 = vmatpush.bf16.msrb.mxu2 %v1841_v53  ;;  %v1839_v59 = vld [vmem:[#allocation3 + $0x88] sm:$0xff]  ;;  %s1438_s30 = sshll.u32 %s445_s25, 4  ;;  %s1439_s30 = int_to_ptr.vmem [resolvable:$true] %s1438_s30 }
  0x36   : > { %v534_v16 = vrot.slane %v1898_v14, 1  ;;  %699 = vmatpush.bf16.msrb.mxu0 %v1828_v30  ;;  %v1840_v56 = vld [vmem:[#allocation3 + $0x90] sm:$0xff]  ;;  %v1848_v60 = vld [vmem:[#allocation3 + $0xa8] sm:$0xff]  ;;  %v1838_v63 = vld [vmem:[#allocation3 + $0x80] sm:$0xff]  ;;  %s1428_s14 = scalar_lea.sflag [#allocation5], %s444_s23  ;;  %s2135_s5 = scalar_lea.hbm %s2455_s11, 2 }
  0x37   : > { %v480_v17 = vor.u32 %v479_v11, %v475_v10  ;;  %v535_v18 = vrot.slane %v472_v15, 1  ;;  %v482_v19 = vshll.u32 %v472_v15, 16  ;;  %637 = vmatpush.bf16.msra.mxu3 %v1835_v29  ;;  %v1849_v57 = vld [vmem:[#allocation3 + $0xb0] sm:$0xff]  ;;  %v1833_v24 = vld [vmem:[#allocation3 + $0x78] sm:$0xff]  ;;  %v1847_v25 = vld [vmem:[#allocation3 + $0xa0] sm:$0xff] }
  0x38   : > { %v805_v52 = vld [vmem:[#allocation2 + $0xc] sm:$0x1]  ;;  %v1989_v61 = vld [vmem:[#allocation2] sm:$0x8]  ;;  %v1831_v27 = vld [vmem:[#allocation3 + $0x68] sm:$0xff] }
  0x39   : > { %v536_v20 = vsel %vm533_vm2, %v534_v16, %v535_v18  ;;  %v484_v21 = vrot.slane %v482_v19, 1  ;;  %v820_v58 = vunpack.c.l.b16 %v805_v52  ;;  %751 = vmatpush.bf16.msrb.mxu2 %v1840_v56  ;;  %v1832_v26 = vld [vmem:[#allocation3 + $0x70] sm:$0xff]  ;;  %v1830_v28 = vld [vmem:[#allocation3 + $0x60] sm:$0xff]  ;;  %v1856_v56 = vld [vmem:[#allocation6 + $0x28] sm:$0xff] }
  0x3a   : > { %1553 = vmatmul.msk.bf16.vlgmr.msra.gmra.mxu2 %vm486_vm1, %v536_v20  ;;  %700 = vmatpush.bf16.msrb.mxu0 %v1827_v32  ;;  %v1857_v52 = vld [vmem:[#allocation6 + $0x30] sm:$0xff]  ;;  %v1863_v53 = vld [vmem:[#allocation6 + $0x60] sm:$0xff] }
  0x3b   : > { %v485_v22 = vsel %vm473_vm3, %v480_v17, %v484_v21  ;;  %638 = vmatpush.bf16.msra.mxu3 %v1834_v31  ;;  %v822_v62 = vpack.c.b16 %v820_v58, %v820_v58  ;;  %v1872_v58 = vld [vmem:[#allocation6 + $0xa0] sm:$0xff] }
  0x3c   : > { %1550 = vmatmul.msk.bf16.vlgmr.msra.gmra.mxu0 %vm486_vm1, %v485_v22 }
  0x3d   : > { %752 = vmatpush.bf16.msrb.mxu2 %v1839_v59  ;;  %v831_v3 = vshll.u32 %v822_v62, 16  ;;  %v1855_v59 = vld [vmem:[#allocation6 + $0x20] sm:$0xff]  ;;  %v1854_v62 = vld [vmem:[#allocation6 + $0x18] sm:$0xff] }
  0x3e   : > { %701 = vmatpush.bf16.msrb.mxu0 %v1826_v37 }
  0x3f   : > { %866 = vmatpush.bf16.msrb.mxu3 %v1846_v33  ;;  %v833_v10 = vrot.slane %v831_v3, 1  ;;  %v1853_v3 = vld [vmem:[#allocation6 + $0x10] sm:$0xff] }
  0x41   : > { %753 = vmatpush.bf16.msrb.mxu2 %v1838_v63  ;;  %v1860_v63 = vld [vmem:[#allocation6 + $0x48] sm:$0xff] }
  0x42   : > { %920 = vmatpush.bf16.msra.mxu0 %v1850_v54  ;;  %v1873_v54 = vld [vmem:[#allocation6 + $0xa8] sm:$0xff] }
  0x43   : > { %867 = vmatpush.bf16.msrb.mxu3 %v1845_v38 }
  0x45   : > { %793 = vmatpush.bf16.msra.mxu2 %v1833_v24 }
  0x46   : > { %921 = vmatpush.bf16.msra.mxu0 %v1849_v57  ;;  %v1862_v57 = vld [vmem:[#allocation6 + $0x58] sm:$0xff] }
  0x47   : > { %868 = vmatpush.bf16.msrb.mxu3 %v1844_v42 }
  0x49   : > { %794 = vmatpush.bf16.msra.mxu2 %v1832_v26 }
  0x4a   : > { %922 = vmatpush.bf16.msra.mxu0 %v1848_v60  ;;  %v1861_v60 = vld [vmem:[#allocation6 + $0x50] sm:$0xff] }
  0x4b   : > { %869 = vmatpush.bf16.msrb.mxu3 %v1843_v45  ;;  %v1866_v45 = vld [vmem:[#allocation6 + $0x78] sm:$0xff] }
  0x4c   : > { %1048 = vmatpush.bf16.msrb.mxu1 %v1866_v45 }
  0x4d   : > { %795 = vmatpush.bf16.msra.mxu2 %v1831_v27  ;;  %v1993_v27 = vld [vmem:[#allocation2] sm:$0x8] }
  0x4e   : > { %923 = vmatpush.bf16.msra.mxu0 %v1847_v25 }
  0x51   : > { %796 = vmatpush.bf16.msra.mxu2 %v1830_v28 }
  0xb0   : > { %v522_v34 = vpop.f32.mrf.mxu1 }
  0xb8   : > { %v524_v47 = vpop.f32.mrf.mxu1 }
  0xb9   : > { %v503_v35 = vpop.f32.mrf.mxu0 }
  0xba   : > { %v523_v36 = vadd.f32 %v522_v34, %v503_v35 }
  0xbd   : > { %v552_v40 = vpop.f32.mrf.mxu2 }
  0xbe   : > { %v557_v41 = vadd.f32 %v552_v40, %v523_v36 }
  0xc0   : > { %v563_v43 = vadd.f32 %v1984_v39, %v557_v41 }
  0xc1   : > { %v505_v44 = vpop.f32.mrf.mxu0 }
  0xc2   : > { %v565_v46 = vpack.c.bf16 %v563_v43, %v563_v43  ;;  %v525_v48 = vadd.f32 %v524_v47, %v505_v44  ;;  %v1865_v47 = vld [vmem:[#allocation6 + $0x70] sm:$0xff] }
  0xc3   : > { %1049 = vmatpush.bf16.msrb.mxu1 %v1865_v47 }
  0xc4   : > { %567 = vst [vmem:[#allocation2 + $0x4] sm:$0xf] %v565_v46 }
  0xc5   : > { %v554_v49 = vpop.f32.mrf.mxu2 }
  0xc6   : > { %v558_v50 = vadd.f32 %v554_v49, %v525_v48  ;;  %v1875_v48 = vld [vmem:[#allocation6 + $0xb8] sm:$0xff] }
  0xc7   : > { %v1858_v49 = vld [vmem:[#allocation6 + $0x38] sm:$0xff] }
  0xc8   : > { %v564_v51 = vadd.f32 %v1984_v39, %v558_v50  ;;  %v1864_v50 = vld [vmem:[#allocation6 + $0x68] sm:$0xff] }
  0xc9   : > { %1050 = vmatpush.bf16.msrb.mxu1 %v1864_v50 }
  0xca   : > { %v566_v55 = vpack.c.bf16 %v564_v51, %v564_v51  ;;  %v1874_v51 = vld [vmem:[#allocation6 + $0xb0] sm:$0xff] }
  0xcb   : > { %v2175_v1 = vld [vmem:[#allocation2] sm:$0xf0]  }
  0xcc   : > { %568 = vst [vmem:[#allocation2 + $0x8] sm:$0xf] %v566_v55  ;;  %v1990_v7 = vor.u32 %v2175_v1, %v1989_v61  ;;  %v1871_v61 = vld [vmem:[#allocation6 + $0x98] sm:$0xff] }
  0xcd   : > { %1051 = vmatpush.bf16.msrb.mxu1 %v1863_v53  ;;  %v1883_v53 = vld [vmem:[#allocation8 + $0x38] sm:$0xff] }
  0xce   : > { %v651_v13 = vshrl.u32 %v1990_v7, 16  ;;  %v654_v14 = vshll.u32 %v1990_v7, 16 }
  0xd0   : > { %v653_v18 = vrot.slane %v651_v13, 3  ;;  %v656_v19 = vrot.slane %v654_v14, 4  ;;  %v1868_v13 = vld [vmem:[#allocation6 + $0x80] sm:$0xff] }
  0xd1   : > { %1052 = vmatpush.bf16.msrb.mxu1 %v1862_v57  ;;  %v1851_v14 = vld [vmem:[#allocation6] sm:$0xff]  ;;  %v1879_v57 = vld [vmem:[#allocation8 + $0x18] sm:$0xff] }
  0xd2   : > { %v657_v21 = vor.u32 %v656_v19, %v653_v18 }
  0xd3   : > { %v570_v0 = vld [vmem:[#allocation2 + $0x4] sm:$0xff]  }
  0xd4   : > { %v1842_v2 = vld [vmem:[#allocation2 + $0x4] sm:$0xff]  ;;  %v601_v4 = vunpack.c.h.b16 %v570_v0  ;;  %717 = vrot.lane.b32.xlu0 %v570_v0, %s2200_s15  ;;  %1570 = vmatmul.msk.bf16.vlgmr.msra.gmra.mxu3 %vm627_vm7, %v570_v0 }
  0xd5   : > { %v826_v5 = vshll.u32 %v1842_v2, 16  ;;  %v824_v8 = vshrl.u32 %v1842_v2, 16  ;;  %1235 = vmatpush.bf16.msra.mxu3 %v1875_v48  ;;  %1053 = vmatpush.bf16.msrb.mxu1 %v1861_v60  ;;  %v1870_v0 = vld [vmem:[#allocation6 + $0x90] sm:$0xff]  ;;  %v1876_v60 = vld [vmem:[#allocation8] sm:$0xff] }
  0xd6   : > { %v648_v6 = vpack.c.b16 %v601_v4, %v601_v4  ;;  %v1985_v4 = vld [vmem:[%s2448_s4] ss:$0 sm:$0xff] }
  0xd7   : > { %v828_v9 = vrot.slane %v826_v5, 1  ;;  %v1859_v5 = vld [vmem:[#allocation6 + $0x40] sm:$0xff] }
  0xd8   : > { %v659_v11 = vshrl.u32 %v648_v6, 16  ;;  %v662_v12 = vshll.u32 %v648_v6, 16  ;;  %v1869_v6 = vld [vmem:[#allocation6 + $0x88] sm:$0xff] }
  0xd9   : > { %v829_v15 = vor.u32 %v828_v9, %v824_v8  ;;  %1236 = vmatpush.bf16.msra.mxu3 %v1874_v51  ;;  %1054 = vmatpush.bf16.msrb.mxu1 %v1860_v63 }
  0xda   : > { %v661_v16 = vrot.slane %v659_v11, 3  ;;  %v664_v17 = vrot.slane %v662_v12, 4  ;;  %v1852_v11 = vld [vmem:[#allocation6 + $0x8] sm:$0xff] }
  0xdb   : > { %v834_v20 = vsel %vm473_vm3, %v829_v15, %v833_v10 }
  0xdc   : > { %887 = vrot.lane.b32.xlu1 %v834_v20, %s2200_s15  ;;  %v665_v22 = vor.u32 %v664_v17, %v661_v16 }
  0xdd   : > { %1237 = vmatpush.bf16.msra.mxu3 %v1873_v54  ;;  %1055 = vmatpush.bf16.msrb.mxu1 %v1859_v5  ;;  %v1882_v54 = vld [vmem:[#allocation8 + $0x30] sm:$0xff] }
  0xde   : > { %v666_v23 = vsel %vm649_vm8, %v657_v21, %v665_v22 }
  0xdf   : > { %1587 = vmatmul.msk.bf16.vlgmr.msrb.gmra.mxu0 %vm627_vm7, %v666_v23  ;;  %760 = vrot.lane.b32.xlu0 %v666_v23, %s2200_s15  ;;  %v1148_v23 = vld [vmem:[#allocation2 + $0xc] sm:$0x1] }
  0xe0   : > { %v1171_v26 = vunpack.c.l.b16 %v1148_v23  ;;  %1331 = vmatpush.bf16.msrb.mxu0 %v1883_v53 }
  0xe1   : > { %1238 = vmatpush.bf16.msra.mxu3 %v1872_v58  ;;  %v1878_v58 = vld [vmem:[#allocation8 + $0x10] sm:$0xff] }
  0xe2   : > { %v1173_v28 = vpack.c.b16 %v1171_v26, %v1171_v26  ;;  %v1884_v26 = vld [vmem:[#allocation9] sm:$0xff] }
  0xe4   : > { %1642 = vmatmul.msk.bf16.vlgmr.msrb.gmra.mxu3 %vm627_vm7, %v834_v20  ;;  %1332 = vmatpush.bf16.msrb.mxu0 %v1882_v54 }
  0xe5   : > { %1239 = vmatpush.bf16.msra.mxu3 %v1871_v61 }
  0xe9   : > { %1240 = vmatpush.bf16.msra.mxu3 %v1870_v0  ;;  %v1891_v0 = vld [vmem:[#allocation9 + $0x38] sm:$0xff] }
  0xea   : > { %1413 = vmatpush.bf16.msra.mxu1 %v1891_v0 }
  0xed   : > { %1241 = vmatpush.bf16.msra.mxu3 %v1869_v6 }
  0xf1   : > { %1242 = vmatpush.bf16.msra.mxu3 %v1868_v13 }
 0x146   : > { %v718_v29 = vpop.permute.xlu0 %717 }
 0x147   : > { %1604 = vmatmul.msk.bf16.vlgmr.msrb.gmra.mxu2 %vm627_vm7, %v718_v29 }
 0x148   : > { %1132 = vmatpush.bf16.msrb.mxu2 %v1858_v49 }
 0x14c   : > { %1133 = vmatpush.bf16.msrb.mxu2 %v1857_v52 }
 0x14e   : > { %v888_v30 = vpop.permute.xlu1 %887 }
 0x14f   : > { %1659 = vmatmul.msk.bf16.vlgmr.msra.gmra.mxu0 %vm627_vm7, %v888_v30 }
 0x150   : > { %1134 = vmatpush.bf16.msrb.mxu2 %v1856_v56  ;;  %v1880_v56 = vld [vmem:[#allocation8 + $0x20] sm:$0xff] }
 0x151   : > { %v761_v31 = vpop.permute.xlu0 %760 }
 0x154   : > { %1135 = vmatpush.bf16.msrb.mxu2 %v1855_v59  ;;  %v1877_v59 = vld [vmem:[#allocation8 + $0x8] sm:$0xff] }
 0x157   : > { %1621 = vmatmul.msk.bf16.vlgmr.msra.gmra.mxu2 %vm627_vm7, %v761_v31  ;;  %v2392_v44 = vpop.f32.mrf.mxu3 }
 0x158   : > { %1136 = vmatpush.bf16.msrb.mxu2 %v1854_v62 }
 0x15c   : > { %v2388_v32 = vpop.f32.mrf.mxu0  ;;  %1137 = vmatpush.bf16.msrb.mxu2 %v1853_v3  ;;  %v1889_v3 = vld [vmem:[#allocation9 + $0x28] sm:$0xff] }
 0x15d   : > { %v704_v17 = vadd.f32 %v2388_v32, %v2392_v44 }
 0x15f   : > { %v642_v46 = vpop.f32.mrf.mxu3 }
 0x160   : > { %1138 = vmatpush.bf16.msrb.mxu2 %v1852_v11  ;;  %v1888_v11 = vld [vmem:[#allocation9 + $0x20] sm:$0xff] }
 0x164   : > { %v705_v34 = vpop.f32.mrf.mxu0  ;;  %1139 = vmatpush.bf16.msrb.mxu2 %v1851_v14 }
 0x165   : > { %v706_v2 = vadd.f32 %v705_v34, %v642_v46 }
 0x167   : > { %v871_v55 = vpop.f32.mrf.mxu3 }
 0x168   : > { %v876_v18 = vadd.f32 %v871_v55, %v704_v17  ;;  %v1881_v55 = vld [vmem:[#allocation8 + $0x28] sm:$0xff] }
 0x169   : > { %1333 = vmatpush.bf16.msrb.mxu0 %v1881_v55 }
 0x16d   : > { %1334 = vmatpush.bf16.msrb.mxu0 %v1880_v56 }
 0x16f   : > { %v873_v1 = vpop.f32.mrf.mxu3 }
 0x170   : > { %v877_v7 = vadd.f32 %v873_v1, %v706_v2  ;;  %v1890_v1 = vld [vmem:[#allocation9 + $0x30] sm:$0xff] }
 0x171   : > { %1335 = vmatpush.bf16.msrb.mxu0 %v1879_v57  ;;  %1414 = vmatpush.bf16.msra.mxu1 %v1890_v1 }
 0x175   : > { %1336 = vmatpush.bf16.msrb.mxu0 %v1878_v58  ;;  %1415 = vmatpush.bf16.msra.mxu1 %v1889_v3 }
 0x179   : > { %1337 = vmatpush.bf16.msrb.mxu0 %v1877_v59  ;;  %1416 = vmatpush.bf16.msra.mxu1 %v1888_v11 }
 0x17d   : > { %1338 = vmatpush.bf16.msrb.mxu0 %v1876_v60 }
 0x1ca   : > { %v755_v33 = vpop.f32.mrf.mxu2 }
 0x1cc   : > { %v925_v36 = vpop.f32.mrf.mxu0 }
 0x1d2   : > { %v757_v35 = vpop.f32.mrf.mxu2 }
 0x1d4   : > { %v927_v42 = vpop.f32.mrf.mxu0 }
 0x1da   : > { %v798_v37 = vpop.f32.mrf.mxu2 }
 0x1db   : > { %v799_v38 = vadd.f32 %v798_v37, %v755_v33  ;;  %v1182_v33 = vshll.u32 %v1173_v28, 16 }
 0x1dd   : > { %v930_v39 = vadd.f32 %v925_v36, %v799_v38 }
 0x1df   : > { %934 = vrot.lane.b32.xlu1 %v930_v39, %s2200_s15  ;;  %v1184_v39 = vrot.slane %v1182_v33, 1 }
 0x1e2   : > { %v800_v40 = vpop.f32.mrf.mxu2 }
 0x1e3   : > { %v801_v41 = vadd.f32 %v800_v40, %v757_v35 }
 0x1e5   : > { %v931_v43 = vadd.f32 %v927_v42, %v801_v41 }
 0x1e7   : > { %936 = vrot.lane.b32.xlu2 %v931_v43, %s2200_s15  ;;  %s2129_s15 = sshra.s32 %s1441_s12, 4  ;;  %s2130_s15 = int_to_ptr.hbm [resolvable:$true] %s2129_s15 }
 0x1e8   : > { %s2131_s24 = scalar_lea.hbm %s2130_s15, 1  ;;  %p2136_p3 = scmp.lt.s32.totalorder %s2130_s15, %s2455_s11 }
 0x1e9   : > { %p2132_p0 = scmp.ne.s32.totalorder %s2130_s15, %s2131_s24  ;;  %p2137_p4 = scmp.lt.s32.totalorder %s2135_s5, %s2131_s24 }
 0x1eb   : > { %p2133_p1 = pnand %p2132_p0, %p2299_p5  ;;  %p2138_p7 = por %p2137_p4, %p2136_p3 }
 0x1ed   : > { %p2134_p2 = pneg %p2133_p1 }
 0x1ef   : > { %p2139_p8 = pnand %p2138_p7, %p2134_p2 }
 0x241   : > { %v937_v8 = vpop.permute.xlu2 %936 }
 0x242   : > { %v941_v9 = vsel %vm627_vm7, %v877_v7, %v937_v8  ;;  %v1986_v7 = vld [vmem:[%s2450_s6] ss:$0 sm:$0xff] }
 0x243   : > { %v947_v10 = vadd.f32 %v1985_v4, %v941_v9 }
 0x245   : > { %vm949_vm9 = vcmp.gt.f32.partialorder %v947_v10, 0.0  ;;  %v951_v12 = vmul.f32 0.01, %v947_v10 }
 0x247   : > { %v953_v15 = vsel %vm949_vm9, %v947_v10, %v951_v12 }
 0x248   : > { %v955_v16 = vpack.c.bf16 %v953_v15, %v953_v15  ;;  %v1887_v15 = vld [vmem:[#allocation9 + $0x18] sm:$0xff] }
 0x249   : > { %1417 = vmatpush.bf16.msra.mxu1 %v1887_v15 }
 0x24a   : > { %957 = vst [vmem:[#allocation2 + $0x8] sm:$0xf] %v955_v16 }
 0x251   : > { %v935_v19 = vpop.permute.xlu1 %934 }
 0x252   : > { %v940_v20 = vsel %vm627_vm7, %v876_v18, %v935_v19  ;;  %v1886_v18 = vld [vmem:[#allocation9 + $0x10] sm:$0xff] }
 0x253   : > { %v946_v21 = vadd.f32 %v1985_v4, %v940_v20  ;;  %1418 = vmatpush.bf16.msra.mxu1 %v1886_v18 }
 0x255   : > { %vm948_vm10 = vcmp.gt.f32.partialorder %v946_v21, 0.0  ;;  %v950_v22 = vmul.f32 0.01, %v946_v21 }
 0x257   : > { %v952_v24 = vsel %vm948_vm10, %v946_v21, %v950_v22 }
 0x258   : > { %v954_v25 = vpack.c.bf16 %v952_v24, %v952_v24 }
 0x25a   : > { %956 = vst [vmem:[#allocation2 + $0x4] sm:$0xf] %v954_v25  ;;  %v1885_v25 = vld [vmem:[#allocation9 + $0x8] sm:$0xff] }
 0x25b   : > { %1419 = vmatpush.bf16.msra.mxu1 %v1885_v25 }
 0x25f   : > { %1420 = vmatpush.bf16.msra.mxu1 %v1884_v26 }
 0x261   : > { %v959_v29 = vld [vmem:[#allocation2 + $0x4] sm:$0xff]  }
 0x262   : > { %v2176_v30 = vld [vmem:[#allocation2] sm:$0xf0]   ;;  %v997_v34 = vunpack.c.h.b16 %v959_v29  ;;  %1056 = vmatmul.bf16.vlgmr.msrb.gmra.mxu1 %v959_v29 }
 0x263   : > { %v1867_v31 = vld [vmem:[#allocation2 + $0x4] sm:$0xff]  ;;  %v1994_v35 = vor.u32 %v2176_v30, %v1993_v27  ;;  %v1282_v27 = vld [vmem:[%s2452_s8] sm:$0x1] }
 0x264   : > { %v1177_v32 = vshll.u32 %v1867_v31, 16  ;;  %v1065_v36 = vpack.c.b16 %v997_v34, %v997_v34  ;;  %v1175_v37 = vshrl.u32 %v1867_v31, 16 }
 0x265   : > { %v1067_v40 = vshrl.u32 %v1994_v35, 16  ;;  %v1070_v41 = vshll.u32 %v1994_v35, 16 }
 0x266   : > { %v1179_v38 = vrot.slane %v1177_v32, 1  ;;  %v1075_v42 = vshrl.u32 %v1065_v36, 16  ;;  %v1078_v43 = vshll.u32 %v1065_v36, 16  ;;  %v1364_v32 = vld [vmem:[%s2454_s10] sm:$0x1] }
 0x267   : > { %v1069_v45 = vrot.slane %v1067_v40, 3  ;;  %v1072_v46 = vrot.slane %v1070_v41, 4 }
 0x268   : > { %v1180_v44 = vor.u32 %v1179_v38, %v1175_v37  ;;  %v1077_v47 = vrot.slane %v1075_v42, 3  ;;  %v1080_v48 = vrot.slane %v1078_v43, 4 }
 0x269   : > { %v1073_v50 = vor.u32 %v1072_v46, %v1069_v45 }
 0x26a   : > { %v1185_v49 = vsel %vm473_vm3, %v1180_v44, %v1184_v39  ;;  %v1081_v51 = vor.u32 %v1080_v48, %v1077_v47 }
 0x26b   : > { %1243 = vmatmul.bf16.vlgmr.msra.gmra.mxu3 %v1185_v49 }
 0x26c   : > { %v1082_v52 = vsel %vm649_vm8, %v1073_v50, %v1081_v51 }
 0x26d   : > { %1140 = vmatmul.bf16.vlgmr.msrb.gmra.mxu2 %v1082_v52 }
 0x2df   : > { %v1057_v61 = vpop.f32.mrf.mxu1 }
 0x2e7   : > { %v1059_v4 = vpop.f32.mrf.mxu1 }
 0x2ee   : > { %v1244_v62 = vpop.f32.mrf.mxu3 }
 0x2f0   : > { %v1141_v63 = vpop.f32.mrf.mxu2 }
 0x2f1   : > { %v1142_v2 = vadd.f32 %v1141_v63, %v1057_v61 }
 0x2f3   : > { %v1249_v6 = vadd.f32 %v1244_v62, %v1142_v2 }
 0x2f5   : > { %v1255_v12 = vadd.f32 %v1986_v7, %v1249_v6 }
 0x2f6   : > { %v1246_v9 = vpop.f32.mrf.mxu3 }
 0x2f8   : > { %v1143_v5 = vpop.f32.mrf.mxu2 }
 0x2f9   : > { %v1144_v8 = vadd.f32 %v1143_v5, %v1059_v4 }
 0x2fb   : > { %v1250_v10 = vadd.f32 %v1246_v9, %v1144_v8 }
 0x2fd   : > { %v1256_v13 = vadd.f32 %v1986_v7, %v1250_v10 }
 0x2ff   : > { %v1257_v14 = vadd.f32 %v1256_v13, %v1255_v12 }
 0x301   : > { %v1258_v16 = vrot.slane %v1257_v14, 4 }
 0x303   : > { %v1259_v17 = vadd.f32 %v1258_v16, %v1257_v14 }
 0x305   : > { %v1260_v19 = vrot.slane %v1259_v17, 2 }
 0x307   : > { %v1261_v20 = vadd.f32 %v1260_v19, %v1259_v17 }
 0x309   : > { %v1262_v21 = vrot.slane %v1261_v20, 1 }
 0x30b   : > { %v1263_v22 = vadd.f32 %v1262_v21, %v1261_v20 }
 0x30d   : > { %v1264_v23 = vmul.f32 0.0625, %v1263_v22 }
 0x30f   : > { %v1265_v24 = vpack.c.bf16 %v1264_v23, %v1264_v23 }
 0x311   : > { %1339 = vmatmul.bf16.vlgmr.msrb.gmra.mxu0 %v1265_v24 }
 0x38e   : > { %v1340_v28 = vpop.f32.mrf.mxu0 }
 0x38f   : > { %v1341_v29 = vadd.f32 %v1340_v28, %v1282_v27 }
 0x391   : > { %vm1344_vm11 = vcmp.gt.f32.partialorder %v1341_v29, 0.0  ;;  %v1345_v30 = vmul.f32 0.01, %v1341_v29 }
 0x393   : > { %v1346_v31 = vsel %vm1344_vm11, %v1341_v29, %v1345_v30 }
 0x394   : > { %v1347_v33 = vpack.c.bf16 %v1346_v31, %v1346_v31 }
 0x396   : > { %v1342_v34 = vpop.f32.mrf.mxu0  ;;  %1421 = vmatmul.bf16.vlgmr.msra.gmra.mxu1 %v1347_v33 }
 0x413   : > { %v1422_v35 = vpop.f32.mrf.mxu1 }
 0x414   : > { %v1423_v36 = vadd.f32 %v1422_v35, %v1364_v32 }
 0x416   : > { %1426 = vst [vmem:[%s445_s25] sm:$0x1] %v1423_v36 }
 0x417   : > { %2142 = shalt.err (!%p2139_p8)
}
 0x418   : > { %1916 = dma.vmem_to_hbm [thread:$0]  (%p2299_p5), %s1439_s30, 16, %s1441_s12, %s1428_s14  }
 0x41b   : > { %v1424_v37 = vpop.f32.mrf.mxu1 }
 0x41c PF: > { %s2474_s19 = sld [smem:[#allocation16_spill]]  ;;  %p1943_p9 = scmp.ge.s32.totalorder %s2191_s20, 2 }
 0x41e   : > { %p1932_p10 = pnand %p1943_p9, %p2303_p6 }
 0x420   : > { %p1933_p11 = pneg %p1932_p10 }
 0x422   : > { %s1452_s26 = sand.u32 1, %s2474_s19  }
 0x423   : > { %s1453_s28 = scalar_lea.sflag [#allocation5], %s1452_s26 }
 0x424   : > { %2172 = dma.done.wait (%p1933_p11), %s1453_s28, 16  }
 0x425   : > { %2174 = vsyncadd (%p1933_p11), %s1453_s28, 4294967280  ;;  %s2476_s20 = sld [smem:[#allocation18_spill]]  ;;  %s2479_s17 = smov %s2183_s18 }
 0x426   : > { %s2477_s29 = sld [smem:[#allocation17_spill]] }
 0x427   : > { %s2478_s19 = sld [smem:[#allocation19_spill]] }
 0x42b   : > { %p24_p12 = scmp.ge.s32.totalorder %s2476_s20, 4  }
 0x42c   : > { %s2480_s18 = smov %s2477_s29 }
 0x42d   :  { %26 = sbr.rel (!%p24_p12) target bundleno = 9 (0x9), region = 125 }
 0x432   :  { %1458 = vsyncpa [#allocation4], 1 }
 0x433   :  { %1460 = vsyncpa [#allocation4 + $0x1], 1 }
 0x434   :  { %1461 = vsyncpa [#allocation7], 1 }
 0x435   :  { %1462 = vsyncpa [#allocation10], 1 }
 0x436   :  { %1463 = vsyncpa [#allocation5], 1 }
 0x437   :  { %1465 = vsyncpa [#allocation5 + $0x1], 1 }

// kernel: tpu_custom_call.1
= control target key start
LH: loop header
LB: loop body
LE: loop exit
PB: predicated region body
PF: predicated region fallthrough
CT: control target
= control target key end

     0   :  { %s2444_s0 = inlined_call_operand.vmem [shape: bf16[2,18,8], index: 0, kind: input, shape index: {}]   ;;  %s2445_s1 = inlined_call_operand.vmem [shape: bf16[3,8,128], index: 1, kind: input, shape index: {}]   ;;  %s2446_s2 = inlined_call_operand.vmem [shape: f32[1,128], index: 2, kind: input, shape index: {}]   ;;  %s2447_s3 = inlined_call_operand.hbm [shape: bf16[2,3,64,64], index: 3, kind: input, shape index: {}]   ;;  %s2448_s4 = inlined_call_operand.vmem [shape: f32[1,128], index: 4, kind: input, shape index: {}]   ;;  %s2449_s5 = inlined_call_operand.hbm [shape: bf16[3,128,128], index: 5, kind: input, shape index: {}]   ;;  %s2450_s6 = inlined_call_operand.vmem [shape: f32[1,128], index: 6, kind: input, shape index: {}]   ;;  %s2451_s7 = inlined_call_operand.hbm [shape: bf16[128,128], index: 7, kind: input, shape index: {}]   ;;  %s2452_s8 = inlined_call_operand.vmem [shape: f32[1,128], index: 8, kind: input, shape index: {}]   ;;  %s2453_s9 = inlined_call_operand.hbm [shape: bf16[128,128], index: 9, kind: input, shape index: {}]   ;;  %s2454_s10 = inlined_call_operand.vmem [shape: f32[1,128], index: 10, kind: input, shape index: {}]   ;;  %s2455_s11 = inlined_call_operand.hbm [shape: f32[2,1,128], index: 11, kind: output, shape index: {}]  }
   0x1   :  { %2461 = sst [smem:[#allocation21_spill]] %s2447_s3 }
   0x2   :  { %2462 = sst [smem:[#allocation22_spill]] %s2449_s5 }
   0x3   :  { %16 = vsyncpa [#allocation4], 0 }
   0x4   :  { %17 = vsyncpa [#allocation7], 0 }
   0x5   :  { %18 = vsyncpa [#allocation10], 0 }
   0x6   :  { %19 = vsyncpa [#allocation5], 0 }
   0x7   :  { %21 = vsyncpa [#allocation5 + $0x1], 0  ;;  %s2261_s17 = smov 0   ;;  %s2263_s18 = smov 0  }
   0x8   :  { %s2265_s19 = smov 0   ;;  %s2267_s20 = smov 0  }
   0x9 LB: > { %2463 = sst [smem:[#allocation16_spill]] %s2179_s17  ;;  %s2282_s21 = sadd.s32 4294967295, %s2191_s20   ;;  %s2191_s20 = sphi %s2267_s20, %s2476_s20   ;;  %s2187_s19 = sphi %s2265_s19, %s2478_s19   ;;  %s2183_s18 = sphi %s2263_s18, %s2480_s18   ;;  %s2179_s17 = sphi %s2261_s17, %s2479_s17  }
   0xa   : > { %2464 = sst [smem:[#allocation17_spill]] %s2187_s19  ;;  %s1536_s22 = sadd.s32 4294967294, %s2191_s20  }
   0xb   : > { %s2286_s23 = sadd.s32 1, %s2191_s20   ;;  %s270_s24 = sadd.s32 1, %s2187_s19 }
   0xc   : > { %2465 = sst [smem:[#allocation18_spill]] %s2286_s23  ;;  %s267_s25 = ssub.s32 %s2191_s20, %s2286_s23 }
   0xd   : > { %p280_p0 = scmp.ne.s32.totalorder %s2187_s19, %s2183_s18  ;;  %p268_p1 = scmp.eq.s32.totalorder %s267_s25, 0 }
   0xe   : > { %p281_p2 = scmp.eq.s32.totalorder %s2282_s21, 1  ;;  %p286_p3 = scmp.ne.s32.totalorder %s2183_s18, %s2179_s17 }
   0xf   : > { %p287_p4 = scmp.eq.s32.totalorder %s1536_s22, 1  ;;  %p1537_p7 = scmp.ge.s32.totalorder %s2191_s20, 1 }
  0x10   : > { %s2297_s26 = scalar_select %p268_p1, %s2187_s19, %s270_s24  }
  0x11   : > { %p2299_p5 = por %p281_p2, %p280_p0  ;;  %p2303_p6 = por %p287_p4, %p286_p3 }
  0x12   : > { %2466 = sst [smem:[#allocation19_spill]] %s2297_s26  ;;  %p294_p8 = scmp.lt.s32.totalorder %s2191_s20, 3 }
  0x13   : > { %s2468_s28 = scalar_select %p2303_p6, 1, 0 }
  0x14   : > { %p1935_p9 = scmp.eq.s32.totalorder %s2282_s21, 0  ;;  %p2310_p10 = pnand %p1537_p7, %p294_p8 }
  0x15   : > { %2469 = sst [smem:[#allocation20_spill]] %s2468_s28  ;;  %s2193_s24 = smov [#allocation6]  }
  0x16   : > { %s2471_s5 = sld [smem:[#allocation22_spill]]  ;;  %p1918_p11 = pneg %p2310_p10 }
  0x17   : > { %s2472_s3 = sld [smem:[#allocation21_spill]]  ;;  %s330_s25 = sshll.u32 %s2193_s24, 4  ;;  %s331_s25 = int_to_ptr.vmem [resolvable:$true] %s330_s25 }
  0x18   : > { %p2324_p12 = pnand %p1935_p9, %p1918_p11  ;;  %s2194_s30 = smov 64  }
  0x19   : > { %s2195_s12 = smov 4   ;;  %s345_s26 = sshll.u32 %s2451_s7, 4  ;;  %s346_s26 = int_to_ptr.hbm [resolvable:$true] %s345_s26 }
  0x1a   : > { %s362_s23 = sshll.u32 %s2453_s9, 4  ;;  %s2197_s28 = smov [#allocation8]   ;;  %s363_s23 = int_to_ptr.hbm [resolvable:$true] %s362_s23 }
  0x1b   : > { %s347_s17 = sshll.u32 %s2197_s28, 4  ;;  %s348_s17 = int_to_ptr.vmem [resolvable:$true] %s347_s17 }
  0x1c   : > { %s328_s13 = sshll.u32 %s2471_s5, 4  ;;  %s2196_s5 = smov [#allocation3]   ;;  %s329_s13 = int_to_ptr.hbm [resolvable:$true] %s328_s13 }
  0x1d   : > { %s311_s16 = sshll.u32 %s2472_s3, 4  ;;  %s313_s14 = sshll.u32 %s2196_s5, 4  ;;  %s312_s16 = int_to_ptr.hbm [resolvable:$true] %s311_s16  ;;  %s314_s14 = int_to_ptr.vmem [resolvable:$true] %s313_s14 }
  0x1e   : > { %1924 = dma.hbm_to_vmem [thread:$0]  (!%p2324_p12), %s329_s13, 3072, %s331_s25, [#allocation7], %s2194_s30, %s2194_s30, %s2195_s12  }
  0x1f   : > { %1921 = dma.hbm_to_vmem [thread:$0]  (!%p2324_p12), %s312_s16, 3072, %s314_s14, [#allocation4], %s2194_s30, %s2194_s30, %s2195_s12  }
  0x20   : > { %1927 = dma.hbm_to_vmem [thread:$0]  (!%p2324_p12), %s346_s26, 1024, %s348_s17, [#allocation7], %s2194_s30, %s2194_s30, %s2195_s12  }
  0x21   : > { %s2198_s13 = smov [#allocation9]   ;;  %391 = sbr.rel (%p2310_p10) target bundleno = 1052 (0x41c), region = 64 }
  0x22   : > { %s364_s5 = sshll.u32 %s2198_s13, 4  ;;  %s365_s5 = int_to_ptr.vmem [resolvable:$true] %s364_s5 }
  0x23   : > { %1930 = dma.hbm_to_vmem [thread:$0]  (!%p2324_p12), %s363_s23, 1024, %s365_s5, [#allocation10], %s2194_s30, %s2194_s30, %s2195_s12  }
  0x26   : > { %2160 = dma.done.wait (%p1935_p9), [#allocation4], 3072  }
  0x27   : > { %2162 = vsyncadd (%p1935_p9), [#allocation4], 4294964224 }
  0x28   : > { %2164 = dma.done.wait (%p1935_p9), [#allocation7], 4096  }
  0x29   : > { %2166 = vsyncadd (%p1935_p9), [#allocation7], 4294963200 }
  0x2a   : > { %2168 = dma.done.wait (%p1935_p9), [#allocation10], 1024  }
  0x2b   : > { %2170 = vsyncadd (%p1935_p9), [#allocation10], 4294966272  ;;  %p446_p13 = scmp.lt.s32.totalorder %s2282_s21, 1  ;;  %vm490_vm0 = vcmask 1043456   ;;  %v461_v0 = vld [vmem:[%s2445_s1] sm:$0xf]  ;;  %s1436_s29 = scalar_lea.hbm %s2455_s11, %s2282_s21 }
  0x2c   : > { %v1552_v2 = vld [vmem:[%s2445_s1 + $0x8] sm:$0xf]  ;;  %v511_v3 = vsel %vm490_vm0, %v461_v0, 0  ;;  %v1549_v6 = vld [vmem:[%s2445_s1 + $0x4] sm:$0xf]  ;;  %vm486_vm1 = vcmask 64512  }
  0x2d   : > { %s447_s3 = scalar_select %p446_p13, %s2282_s21, 1  ;;  %v541_v5 = vsel %vm490_vm0, %v1552_v2, 0  ;;  %520 = vmatpush.bf16.msra.mxu1 %v511_v3  ;;  %v492_v7 = vsel %vm490_vm0, %v1549_v6, 0  ;;  %vm533_vm2 = vcmask 1046528   ;;  %vm473_vm3 = vsmask.f32 7424 }
  0x2e   : > { %550 = vmatpush.bf16.msra.mxu2 %v541_v5  ;;  %501 = vmatpush.bf16.msra.mxu0 %v492_v7  ;;  %v1837_v23 = vld [vmem:[#allocation3 + $0x38] sm:$0xff]  ;;  %vm453_vm4 = vcmask 1040384   ;;  %vm454_vm5 = vsmask.f32 256  ;;  %v1836_v26 = vld [vmem:[#allocation3 + $0x30] sm:$0xff]  ;;  %v2199_v28 = vmov 0  }
  0x2f   : > { %s1899_s17 = smul.u32 12, %s447_s3  ;;  %635 = vmatpush.bf16.msra.mxu3 %v1837_v23  ;;  %vm455_vm6 = vmand %vm453_vm4, %vm454_vm5  ;;  %v456_v24 = vld [vmem:[#allocation2 + $0xc] sm:$0x1]  ;;  %452 = vst [vmem:[#allocation2] sm:$0xf] %v2199_v28  ;;  %v1835_v29 = vld [vmem:[#allocation3 + $0x28] sm:$0xff] }
  0x30   : > { %v457_v25 = vsel %vm455_vm6, 0, %v456_v24  ;;  %v1829_v27 = vld [vmem:[#allocation3 + $0x18] sm:$0xff]  ;;  %v1828_v30 = vld [vmem:[#allocation3 + $0x10] sm:$0xff]  ;;  %v1834_v31 = vld [vmem:[#allocation3 + $0x20] sm:$0xff]  ;;  %vm627_vm7 = vcmask 523264   ;;  %s2200_s15 = smov 64  }
  0x31   : > { %s450_s26 = scalar_lea.vmem %s2444_s0, %s1899_s17  ;;  %458 = vst [vmem:[#allocation2 + $0xc] sm:$0x1] %v457_v25  ;;  %v1827_v32 = vld [vmem:[#allocation3 + $0x8] sm:$0xff]  ;;  %v1846_v33 = vld [vmem:[#allocation3 + $0x58] sm:$0xff]  ;;  %v1826_v37 = vld [vmem:[#allocation3] sm:$0xff]  ;;  %s444_s23 = sand.u32 1, %s2183_s18  }
  0x32   : > { %v1893_v1 = vld [vmem:[%s450_s26] sm:$0xff]   ;;  %v462_v9 = vld [vmem:[%s450_s26 + $0x8] sm:$0x1]  ;;  %698 = vmatpush.bf16.msrb.mxu0 %v1829_v27  ;;  %v1844_v42 = vld [vmem:[#allocation3 + $0x48] sm:$0xff]  ;;  %vm649_vm8 = vsmask.f32 4352 }
  0x33   : > { %v477_v4 = vshll.u32 %v1893_v1, 16  ;;  %v1896_v8 = vld [vmem:[%s450_s26] sm:$0xf0]  ;;  %v475_v10 = vshrl.u32 %v1893_v1, 16  ;;  %v470_v12 = vunpack.c.l.b16 %v462_v9  ;;  %v1897_v13 = vld [vmem:[%s450_s26] sm:$0xe]  ;;  %1551 = vmatmul.msk.bf16.vlgmr.msra.gmra.mxu1 %vm486_vm1, %v1893_v1  ;;  %636 = vmatpush.bf16.msra.mxu3 %v1836_v26 }
  0x34   : > { %v1898_v14 = vor.u32 %v1897_v13, %v1896_v8  ;;  %v1845_v38 = vld [vmem:[#allocation3 + $0x50] sm:$0xff]  ;;  %v1843_v45 = vld [vmem:[#allocation3 + $0x40] sm:$0xff]  ;;  %v1841_v53 = vld [vmem:[#allocation3 + $0x98] sm:$0xff]  ;;  %s445_s25 = scalar_lea.vmem [#allocation11], %s444_s23  ;;  %s1440_s12 = sshll.u32 %s1436_s29, 4  ;;  %s1441_s12 = int_to_ptr.hbm [resolvable:$true] %s1440_s12 }
  0x35   : > { %v479_v11 = vrot.slane %v477_v4, 1  ;;  %v472_v15 = vpack.c.b16 %v470_v12, %v470_v12  ;;  %v1984_v39 = vld [vmem:[%s2446_s2] ss:$0 sm:$0xff]  ;;  %v1850_v54 = vld [vmem:[#allocation3 + $0xb8] sm:$0xff]  ;;  %750 = vmatpush.bf16.msrb.mxu2 %v1841_v53  ;;  %v1839_v59 = vld [vmem:[#allocation3 + $0x88] sm:$0xff]  ;;  %s1438_s30 = sshll.u32 %s445_s25, 4  ;;  %s1439_s30 = int_to_ptr.vmem [resolvable:$true] %s1438_s30 }
  0x36   : > { %v534_v16 = vrot.slane %v1898_v14, 1  ;;  %699 = vmatpush.bf16.msrb.mxu0 %v1828_v30  ;;  %v1840_v56 = vld [vmem:[#allocation3 + $0x90] sm:$0xff]  ;;  %v1848_v60 = vld [vmem:[#allocation3 + $0xa8] sm:$0xff]  ;;  %v1838_v63 = vld [vmem:[#allocation3 + $0x80] sm:$0xff]  ;;  %s1428_s14 = scalar_lea.sflag [#allocation5], %s444_s23  ;;  %s2135_s5 = scalar_lea.hbm %s2455_s11, 2 }
  0x37   : > { %v480_v17 = vor.u32 %v479_v11, %v475_v10  ;;  %v535_v18 = vrot.slane %v472_v15, 1  ;;  %v482_v19 = vshll.u32 %v472_v15, 16  ;;  %637 = vmatpush.bf16.msra.mxu3 %v1835_v29  ;;  %v1849_v57 = vld [vmem:[#allocation3 + $0xb0] sm:$0xff]  ;;  %v1833_v24 = vld [vmem:[#allocation3 + $0x78] sm:$0xff]  ;;  %v1847_v25 = vld [vmem:[#allocation3 + $0xa0] sm:$0xff] }
  0x38   : > { %v805_v52 = vld [vmem:[#allocation2 + $0xc] sm:$0x1]  ;;  %v1989_v61 = vld [vmem:[#allocation2] sm:$0x8]  ;;  %v1831_v27 = vld [vmem:[#allocation3 + $0x68] sm:$0xff] }
  0x39   : > { %v536_v20 = vsel %vm533_vm2, %v534_v16, %v535_v18  ;;  %v484_v21 = vrot.slane %v482_v19, 1  ;;  %v820_v58 = vunpack.c.l.b16 %v805_v52  ;;  %751 = vmatpush.bf16.msrb.mxu2 %v1840_v56  ;;  %v1832_v26 = vld [vmem:[#allocation3 + $0x70] sm:$0xff]  ;;  %v1830_v28 = vld [vmem:[#allocation3 + $0x60] sm:$0xff]  ;;  %v1856_v56 = vld [vmem:[#allocation6 + $0x28] sm:$0xff] }
  0x3a   : > { %1553 = vmatmul.msk.bf16.vlgmr.msra.gmra.mxu2 %vm486_vm1, %v536_v20  ;;  %700 = vmatpush.bf16.msrb.mxu0 %v1827_v32  ;;  %v1857_v52 = vld [vmem:[#allocation6 + $0x30] sm:$0xff]  ;;  %v1863_v53 = vld [vmem:[#allocation6 + $0x60] sm:$0xff] }
  0x3b   : > { %v485_v22 = vsel %vm473_vm3, %v480_v17, %v484_v21  ;;  %638 = vmatpush.bf16.msra.mxu3 %v1834_v31  ;;  %v822_v62 = vpack.c.b16 %v820_v58, %v820_v58  ;;  %v1872_v58 = vld [vmem:[#allocation6 + $0xa0] sm:$0xff] }
  0x3c   : > { %1550 = vmatmul.msk.bf16.vlgmr.msra.gmra.mxu0 %vm486_vm1, %v485_v22 }
  0x3d   : > { %752 = vmatpush.bf16.msrb.mxu2 %v1839_v59  ;;  %v831_v3 = vshll.u32 %v822_v62, 16  ;;  %v1855_v59 = vld [vmem:[#allocation6 + $0x20] sm:$0xff]  ;;  %v1854_v62 = vld [vmem:[#allocation6 + $0x18] sm:$0xff] }
  0x3e   : > { %701 = vmatpush.bf16.msrb.mxu0 %v1826_v37 }
  0x3f   : > { %866 = vmatpush.bf16.msrb.mxu3 %v1846_v33  ;;  %v833_v10 = vrot.slane %v831_v3, 1  ;;  %v1853_v3 = vld [vmem:[#allocation6 + $0x10] sm:$0xff] }
  0x41   : > { %753 = vmatpush.bf16.msrb.mxu2 %v1838_v63  ;;  %v1860_v63 = vld [vmem:[#allocation6 + $0x48] sm:$0xff] }
  0x42   : > { %920 = vmatpush.bf16.msra.mxu0 %v1850_v54  ;;  %v1873_v54 = vld [vmem:[#allocation6 + $0xa8] sm:$0xff] }
  0x43   : > { %867 = vmatpush.bf16.msrb.mxu3 %v1845_v38 }
  0x45   : > { %793 = vmatpush.bf16.msra.mxu2 %v1833_v24 }
  0x46   : > { %921 = vmatpush.bf16.msra.mxu0 %v1849_v57  ;;  %v1862_v57 = vld [vmem:[#allocation6 + $0x58] sm:$0xff] }
  0x47   : > { %868 = vmatpush.bf16.msrb.mxu3 %v1844_v42 }
  0x49   : > { %794 = vmatpush.bf16.msra.mxu2 %v1832_v26 }
  0x4a   : > { %922 = vmatpush.bf16.msra.mxu0 %v1848_v60  ;;  %v1861_v60 = vld [vmem:[#allocation6 + $0x50] sm:$0xff] }
  0x4b   : > { %869 = vmatpush.bf16.msrb.mxu3 %v1843_v45  ;;  %v1866_v45 = vld [vmem:[#allocation6 + $0x78] sm:$0xff] }
  0x4c   : > { %1048 = vmatpush.bf16.msrb.mxu1 %v1866_v45 }
  0x4d   : > { %795 = vmatpush.bf16.msra.mxu2 %v1831_v27  ;;  %v1993_v27 = vld [vmem:[#allocation2] sm:$0x8] }
  0x4e   : > { %923 = vmatpush.bf16.msra.mxu0 %v1847_v25 }
  0x51   : > { %796 = vmatpush.bf16.msra.mxu2 %v1830_v28 }
  0xb0   : > { %v522_v34 = vpop.f32.mrf.mxu1 }
  0xb8   : > { %v524_v47 = vpop.f32.mrf.mxu1 }
  0xb9   : > { %v503_v35 = vpop.f32.mrf.mxu0 }
  0xba   : > { %v523_v36 = vadd.f32 %v522_v34, %v503_v35 }
  0xbd   : > { %v552_v40 = vpop.f32.mrf.mxu2 }
  0xbe   : > { %v557_v41 = vadd.f32 %v552_v40, %v523_v36 }
  0xc0   : > { %v563_v43 = vadd.f32 %v1984_v39, %v557_v41 }
  0xc1   : > { %v505_v44 = vpop.f32.mrf.mxu0 }
  0xc2   : > { %v565_v46 = vpack.c.bf16 %v563_v43, %v563_v43  ;;  %v525_v48 = vadd.f32 %v524_v47, %v505_v44  ;;  %v1865_v47 = vld [vmem:[#allocation6 + $0x70] sm:$0xff] }
  0xc3   : > { %1049 = vmatpush.bf16.msrb.mxu1 %v1865_v47 }
  0xc4   : > { %567 = vst [vmem:[#allocation2 + $0x4] sm:$0xf] %v565_v46 }
  0xc5   : > { %v554_v49 = vpop.f32.mrf.mxu2 }
  0xc6   : > { %v558_v50 = vadd.f32 %v554_v49, %v525_v48  ;;  %v1875_v48 = vld [vmem:[#allocation6 + $0xb8] sm:$0xff] }
  0xc7   : > { %v1858_v49 = vld [vmem:[#allocation6 + $0x38] sm:$0xff] }
  0xc8   : > { %v564_v51 = vadd.f32 %v1984_v39, %v558_v50  ;;  %v1864_v50 = vld [vmem:[#allocation6 + $0x68] sm:$0xff] }
  0xc9   : > { %1050 = vmatpush.bf16.msrb.mxu1 %v1864_v50 }
  0xca   : > { %v566_v55 = vpack.c.bf16 %v564_v51, %v564_v51  ;;  %v1874_v51 = vld [vmem:[#allocation6 + $0xb0] sm:$0xff] }
  0xcb   : > { %v2175_v1 = vld [vmem:[#allocation2] sm:$0xf0]  }
  0xcc   : > { %568 = vst [vmem:[#allocation2 + $0x8] sm:$0xf] %v566_v55  ;;  %v1990_v7 = vor.u32 %v2175_v1, %v1989_v61  ;;  %v1871_v61 = vld [vmem:[#allocation6 + $0x98] sm:$0xff] }
  0xcd   : > { %1051 = vmatpush.bf16.msrb.mxu1 %v1863_v53  ;;  %v1883_v53 = vld [vmem:[#allocation8 + $0x38] sm:$0xff] }
  0xce   : > { %v651_v13 = vshrl.u32 %v1990_v7, 16  ;;  %v654_v14 = vshll.u32 %v1990_v7, 16 }
  0xd0   : > { %v653_v18 = vrot.slane %v651_v13, 3  ;;  %v656_v19 = vrot.slane %v654_v14, 4  ;;  %v1868_v13 = vld [vmem:[#allocation6 + $0x80] sm:$0xff] }
  0xd1   : > { %1052 = vmatpush.bf16.msrb.mxu1 %v1862_v57  ;;  %v1851_v14 = vld [vmem:[#allocation6] sm:$0xff]  ;;  %v1879_v57 = vld [vmem:[#allocation8 + $0x18] sm:$0xff] }
  0xd2   : > { %v657_v21 = vor.u32 %v656_v19, %v653_v18 }
  0xd3   : > { %v570_v0 = vld [vmem:[#allocation2 + $0x4] sm:$0xff]  }
  0xd4   : > { %v1842_v2 = vld [vmem:[#allocation2 + $0x4] sm:$0xff]  ;;  %v601_v4 = vunpack.c.h.b16 %v570_v0  ;;  %717 = vrot.lane.b32.xlu0 %v570_v0, %s2200_s15  ;;  %1570 = vmatmul.msk.bf16.vlgmr.msra.gmra.mxu3 %vm627_vm7, %v570_v0 }
  0xd5   : > { %v826_v5 = vshll.u32 %v1842_v2, 16  ;;  %v824_v8 = vshrl.u32 %v1842_v2, 16  ;;  %1235 = vmatpush.bf16.msra.mxu3 %v1875_v48  ;;  %1053 = vmatpush.bf16.msrb.mxu1 %v1861_v60  ;;  %v1870_v0 = vld [vmem:[#allocation6 + $0x90] sm:$0xff]  ;;  %v1876_v60 = vld [vmem:[#allocation8] sm:$0xff] }
  0xd6   : > { %v648_v6 = vpack.c.b16 %v601_v4, %v601_v4  ;;  %v1985_v4 = vld [vmem:[%s2448_s4] ss:$0 sm:$0xff] }
  0xd7   : > { %v828_v9 = vrot.slane %v826_v5, 1  ;;  %v1859_v5 = vld [vmem:[#allocation6 + $0x40] sm:$0xff] }
  0xd8   : > { %v659_v11 = vshrl.u32 %v648_v6, 16  ;;  %v662_v12 = vshll.u32 %v648_v6, 16  ;;  %v1869_v6 = vld [vmem:[#allocation6 + $0x88] sm:$0xff] }
  0xd9   : > { %v829_v15 = vor.u32 %v828_v9, %v824_v8  ;;  %1236 = vmatpush.bf16.msra.mxu3 %v1874_v51  ;;  %1054 = vmatpush.bf16.msrb.mxu1 %v1860_v63 }
  0xda   : > { %v661_v16 = vrot.slane %v659_v11, 3  ;;  %v664_v17 = vrot.slane %v662_v12, 4  ;;  %v1852_v11 = vld [vmem:[#allocation6 + $0x8] sm:$0xff] }
  0xdb   : > { %v834_v20 = vsel %vm473_vm3, %v829_v15, %v833_v10 }
  0xdc   : > { %887 = vrot.lane.b32.xlu1 %v834_v20, %s2200_s15  ;;  %v665_v22 = vor.u32 %v664_v17, %v661_v16 }
  0xdd   : > { %1237 = vmatpush.bf16.msra.mxu3 %v1873_v54  ;;  %1055 = vmatpush.bf16.msrb.mxu1 %v1859_v5  ;;  %v1882_v54 = vld [vmem:[#allocation8 + $0x30] sm:$0xff] }
  0xde   : > { %v666_v23 = vsel %vm649_vm8, %v657_v21, %v665_v22 }
  0xdf   : > { %1587 = vmatmul.msk.bf16.vlgmr.msrb.gmra.mxu0 %vm627_vm7, %v666_v23  ;;  %760 = vrot.lane.b32.xlu0 %v666_v23, %s2200_s15  ;;  %v1148_v23 = vld [vmem:[#allocation2 + $0xc] sm:$0x1] }
  0xe0   : > { %v1171_v26 = vunpack.c.l.b16 %v1148_v23  ;;  %1331 = vmatpush.bf16.msrb.mxu0 %v1883_v53 }
  0xe1   : > { %1238 = vmatpush.bf16.msra.mxu3 %v1872_v58  ;;  %v1878_v58 = vld [vmem:[#allocation8 + $0x10] sm:$0xff] }
  0xe2   : > { %v1173_v28 = vpack.c.b16 %v1171_v26, %v1171_v26  ;;  %v1884_v26 = vld [vmem:[#allocation9] sm:$0xff] }
  0xe4   : > { %1642 = vmatmul.msk.bf16.vlgmr.msrb.gmra.mxu3 %vm627_vm7, %v834_v20  ;;  %1332 = vmatpush.bf16.msrb.mxu0 %v1882_v54 }
  0xe5   : > { %1239 = vmatpush.bf16.msra.mxu3 %v1871_v61 }
  0xe9   : > { %1240 = vmatpush.bf16.msra.mxu3 %v1870_v0  ;;  %v1891_v0 = vld [vmem:[#allocation9 + $0x38] sm:$0xff] }
  0xea   : > { %1413 = vmatpush.bf16.msra.mxu1 %v1891_v0 }
  0xed   : > { %1241 = vmatpush.bf16.msra.mxu3 %v1869_v6 }
  0xf1   : > { %1242 = vmatpush.bf16.msra.mxu3 %v1868_v13 }
 0x146   : > { %v718_v29 = vpop.permute.xlu0 %717 }
 0x147   : > { %1604 = vmatmul.msk.bf16.vlgmr.msrb.gmra.mxu2 %vm627_vm7, %v718_v29 }
 0x148   : > { %1132 = vmatpush.bf16.msrb.mxu2 %v1858_v49 }
 0x14c   : > { %1133 = vmatpush.bf16.msrb.mxu2 %v1857_v52 }
 0x14e   : > { %v888_v30 = vpop.permute.xlu1 %887 }
 0x14f   : > { %1659 = vmatmul.msk.bf16.vlgmr.msra.gmra.mxu0 %vm627_vm7, %v888_v30 }
 0x150   : > { %1134 = vmatpush.bf16.msrb.mxu2 %v1856_v56  ;;  %v1880_v56 = vld [vmem:[#allocation8 + $0x20] sm:$0xff] }
 0x151   : > { %v761_v31 = vpop.permute.xlu0 %760 }
 0x154   : > { %1135 = vmatpush.bf16.msrb.mxu2 %v1855_v59  ;;  %v1877_v59 = vld [vmem:[#allocation8 + $0x8] sm:$0xff] }
 0x157   : > { %1621 = vmatmul.msk.bf16.vlgmr.msra.gmra.mxu2 %vm627_vm7, %v761_v31  ;;  %v2392_v44 = vpop.f32.mrf.mxu3 }
 0x158   : > { %1136 = vmatpush.bf16.msrb.mxu2 %v1854_v62 }
 0x15c   : > { %v2388_v32 = vpop.f32.mrf.mxu0  ;;  %1137 = vmatpush.bf16.msrb.mxu2 %v1853_v3  ;;  %v1889_v3 = vld [vmem:[#allocation9 + $0x28] sm:$0xff] }
 0x15d   : > { %v704_v17 = vadd.f32 %v2388_v32, %v2392_v44 }
 0x15f   : > { %v642_v46 = vpop.f32.mrf.mxu3 }
 0x160   : > { %1138 = vmatpush.bf16.msrb.mxu2 %v1852_v11  ;;  %v1888_v11 = vld [vmem:[#allocation9 + $0x20] sm:$0xff] }
 0x164   : > { %v705_v34 = vpop.f32.mrf.mxu0  ;;  %1139 = vmatpush.bf16.msrb.mxu2 %v1851_v14 }
 0x165   : > { %v706_v2 = vadd.f32 %v705_v34, %v642_v46 }
 0x167   : > { %v871_v55 = vpop.f32.mrf.mxu3 }
 0x168   : > { %v876_v18 = vadd.f32 %v871_v55, %v704_v17  ;;  %v1881_v55 = vld [vmem:[#allocation8 + $0x28] sm:$0xff] }
 0x169   : > { %1333 = vmatpush.bf16.msrb.mxu0 %v1881_v55 }
 0x16d   : > { %1334 = vmatpush.bf16.msrb.mxu0 %v1880_v56 }
 0x16f   : > { %v873_v1 = vpop.f32.mrf.mxu3 }
 0x170   : > { %v877_v7 = vadd.f32 %v873_v1, %v706_v2  ;;  %v1890_v1 = vld [vmem:[#allocation9 + $0x30] sm:$0xff] }
 0x171   : > { %1335 = vmatpush.bf16.msrb.mxu0 %v1879_v57  ;;  %1414 = vmatpush.bf16.msra.mxu1 %v1890_v1 }
 0x175   : > { %1336 = vmatpush.bf16.msrb.mxu0 %v1878_v58  ;;  %1415 = vmatpush.bf16.msra.mxu1 %v1889_v3 }
 0x179   : > { %1337 = vmatpush.bf16.msrb.mxu0 %v1877_v59  ;;  %1416 = vmatpush.bf16.msra.mxu1 %v1888_v11 }
 0x17d   : > { %1338 = vmatpush.bf16.msrb.mxu0 %v1876_v60 }
 0x1ca   : > { %v755_v33 = vpop.f32.mrf.mxu2 }
 0x1cc   : > { %v925_v36 = vpop.f32.mrf.mxu0 }
 0x1d2   : > { %v757_v35 = vpop.f32.mrf.mxu2 }
 0x1d4   : > { %v927_v42 = vpop.f32.mrf.mxu0 }
 0x1da   : > { %v798_v37 = vpop.f32.mrf.mxu2 }
 0x1db   : > { %v799_v38 = vadd.f32 %v798_v37, %v755_v33  ;;  %v1182_v33 = vshll.u32 %v1173_v28, 16 }
 0x1dd   : > { %v930_v39 = vadd.f32 %v925_v36, %v799_v38 }
 0x1df   : > { %934 = vrot.lane.b32.xlu1 %v930_v39, %s2200_s15  ;;  %v1184_v39 = vrot.slane %v1182_v33, 1 }
 0x1e2   : > { %v800_v40 = vpop.f32.mrf.mxu2 }
 0x1e3   : > { %v801_v41 = vadd.f32 %v800_v40, %v757_v35 }
 0x1e5   : > { %v931_v43 = vadd.f32 %v927_v42, %v801_v41 }
 0x1e7   : > { %936 = vrot.lane.b32.xlu2 %v931_v43, %s2200_s15  ;;  %s2129_s15 = sshra.s32 %s1441_s12, 4  ;;  %s2130_s15 = int_to_ptr.hbm [resolvable:$true] %s2129_s15 }
 0x1e8   : > { %s2131_s24 = scalar_lea.hbm %s2130_s15, 1  ;;  %p2136_p3 = scmp.lt.s32.totalorder %s2130_s15, %s2455_s11 }
 0x1e9   : > { %p2132_p0 = scmp.ne.s32.totalorder %s2130_s15, %s2131_s24  ;;  %p2137_p4 = scmp.lt.s32.totalorder %s2135_s5, %s2131_s24 }
 0x1eb   : > { %p2133_p1 = pnand %p2132_p0, %p2299_p5  ;;  %p2138_p7 = por %p2137_p4, %p2136_p3 }
 0x1ed   : > { %p2134_p2 = pneg %p2133_p1 }
 0x1ef   : > { %p2139_p8 = pnand %p2138_p7, %p2134_p2 }
 0x241   : > { %v937_v8 = vpop.permute.xlu2 %936 }
 0x242   : > { %v941_v9 = vsel %vm627_vm7, %v877_v7, %v937_v8  ;;  %v1986_v7 = vld [vmem:[%s2450_s6] ss:$0 sm:$0xff] }
 0x243   : > { %v947_v10 = vadd.f32 %v1985_v4, %v941_v9 }
 0x245   : > { %vm949_vm9 = vcmp.gt.f32.partialorder %v947_v10, 0.0  ;;  %v951_v12 = vmul.f32 0.01, %v947_v10 }
 0x247   : > { %v953_v15 = vsel %vm949_vm9, %v947_v10, %v951_v12 }
 0x248   : > { %v955_v16 = vpack.c.bf16 %v953_v15, %v953_v15  ;;  %v1887_v15 = vld [vmem:[#allocation9 + $0x18] sm:$0xff] }
 0x249   : > { %1417 = vmatpush.bf16.msra.mxu1 %v1887_v15 }
 0x24a   : > { %957 = vst [vmem:[#allocation2 + $0x8] sm:$0xf] %v955_v16 }
 0x251   : > { %v935_v19 = vpop.permute.xlu1 %934 }
 0x252   : > { %v940_v20 = vsel %vm627_vm7, %v876_v18, %v935_v19  ;;  %v1886_v18 = vld [vmem:[#allocation9 + $0x10] sm:$0xff] }
 0x253   : > { %v946_v21 = vadd.f32 %v1985_v4, %v940_v20  ;;  %1418 = vmatpush.bf16.msra.mxu1 %v1886_v18 }
 0x255   : > { %vm948_vm10 = vcmp.gt.f32.partialorder %v946_v21, 0.0  ;;  %v950_v22 = vmul.f32 0.01, %v946_v21 }
 0x257   : > { %v952_v24 = vsel %vm948_vm10, %v946_v21, %v950_v22 }
 0x258   : > { %v954_v25 = vpack.c.bf16 %v952_v24, %v952_v24 }
 0x25a   : > { %956 = vst [vmem:[#allocation2 + $0x4] sm:$0xf] %v954_v25  ;;  %v1885_v25 = vld [vmem:[#allocation9 + $0x8] sm:$0xff] }
 0x25b   : > { %1419 = vmatpush.bf16.msra.mxu1 %v1885_v25 }
 0x25f   : > { %1420 = vmatpush.bf16.msra.mxu1 %v1884_v26 }
 0x261   : > { %v959_v29 = vld [vmem:[#allocation2 + $0x4] sm:$0xff]  }
 0x262   : > { %v2176_v30 = vld [vmem:[#allocation2] sm:$0xf0]   ;;  %v997_v34 = vunpack.c.h.b16 %v959_v29  ;;  %1056 = vmatmul.bf16.vlgmr.msrb.gmra.mxu1 %v959_v29 }
 0x263   : > { %v1867_v31 = vld [vmem:[#allocation2 + $0x4] sm:$0xff]  ;;  %v1994_v35 = vor.u32 %v2176_v30, %v1993_v27  ;;  %v1282_v27 = vld [vmem:[%s2452_s8] sm:$0x1] }
 0x264   : > { %v1177_v32 = vshll.u32 %v1867_v31, 16  ;;  %v1065_v36 = vpack.c.b16 %v997_v34, %v997_v34  ;;  %v1175_v37 = vshrl.u32 %v1867_v31, 16 }
 0x265   : > { %v1067_v40 = vshrl.u32 %v1994_v35, 16  ;;  %v1070_v41 = vshll.u32 %v1994_v35, 16 }
 0x266   : > { %v1179_v38 = vrot.slane %v1177_v32, 1  ;;  %v1075_v42 = vshrl.u32 %v1065_v36, 16  ;;  %v1078_v43 = vshll.u32 %v1065_v36, 16  ;;  %v1364_v32 = vld [vmem:[%s2454_s10] sm:$0x1] }
 0x267   : > { %v1069_v45 = vrot.slane %v1067_v40, 3  ;;  %v1072_v46 = vrot.slane %v1070_v41, 4 }
 0x268   : > { %v1180_v44 = vor.u32 %v1179_v38, %v1175_v37  ;;  %v1077_v47 = vrot.slane %v1075_v42, 3  ;;  %v1080_v48 = vrot.slane %v1078_v43, 4 }
 0x269   : > { %v1073_v50 = vor.u32 %v1072_v46, %v1069_v45 }
 0x26a   : > { %v1185_v49 = vsel %vm473_vm3, %v1180_v44, %v1184_v39  ;;  %v1081_v51 = vor.u32 %v1080_v48, %v1077_v47 }
 0x26b   : > { %1243 = vmatmul.bf16.vlgmr.msra.gmra.mxu3 %v1185_v49 }
 0x26c   : > { %v1082_v52 = vsel %vm649_vm8, %v1073_v50, %v1081_v51 }
 0x26d   : > { %1140 = vmatmul.bf16.vlgmr.msrb.gmra.mxu2 %v1082_v52 }
 0x2df   : > { %v1057_v61 = vpop.f32.mrf.mxu1 }
 0x2e7   : > { %v1059_v4 = vpop.f32.mrf.mxu1 }
 0x2ee   : > { %v1244_v62 = vpop.f32.mrf.mxu3 }
 0x2f0   : > { %v1141_v63 = vpop.f32.mrf.mxu2 }
 0x2f1   : > { %v1142_v2 = vadd.f32 %v1141_v63, %v1057_v61 }
 0x2f3   : > { %v1249_v6 = vadd.f32 %v1244_v62, %v1142_v2 }
 0x2f5   : > { %v1255_v12 = vadd.f32 %v1986_v7, %v1249_v6 }
 0x2f6   : > { %v1246_v9 = vpop.f32.mrf.mxu3 }
 0x2f8   : > { %v1143_v5 = vpop.f32.mrf.mxu2 }
 0x2f9   : > { %v1144_v8 = vadd.f32 %v1143_v5, %v1059_v4 }
 0x2fb   : > { %v1250_v10 = vadd.f32 %v1246_v9, %v1144_v8 }
 0x2fd   : > { %v1256_v13 = vadd.f32 %v1986_v7, %v1250_v10 }
 0x2ff   : > { %v1257_v14 = vadd.f32 %v1256_v13, %v1255_v12 }
 0x301   : > { %v1258_v16 = vrot.slane %v1257_v14, 4 }
 0x303   : > { %v1259_v17 = vadd.f32 %v1258_v16, %v1257_v14 }
 0x305   : > { %v1260_v19 = vrot.slane %v1259_v17, 2 }
 0x307   : > { %v1261_v20 = vadd.f32 %v1260_v19, %v1259_v17 }
 0x309   : > { %v1262_v21 = vrot.slane %v1261_v20, 1 }
 0x30b   : > { %v1263_v22 = vadd.f32 %v1262_v21, %v1261_v20 }
 0x30d   : > { %v1264_v23 = vmul.f32 0.0625, %v1263_v22 }
 0x30f   : > { %v1265_v24 = vpack.c.bf16 %v1264_v23, %v1264_v23 }
 0x311   : > { %1339 = vmatmul.bf16.vlgmr.msrb.gmra.mxu0 %v1265_v24 }
 0x38e   : > { %v1340_v28 = vpop.f32.mrf.mxu0 }
 0x38f   : > { %v1341_v29 = vadd.f32 %v1340_v28, %v1282_v27 }
 0x391   : > { %vm1344_vm11 = vcmp.gt.f32.partialorder %v1341_v29, 0.0  ;;  %v1345_v30 = vmul.f32 0.01, %v1341_v29 }
 0x393   : > { %v1346_v31 = vsel %vm1344_vm11, %v1341_v29, %v1345_v30 }
 0x394   : > { %v1347_v33 = vpack.c.bf16 %v1346_v31, %v1346_v31 }
 0x396   : > { %v1342_v34 = vpop.f32.mrf.mxu0  ;;  %1421 = vmatmul.bf16.vlgmr.msra.gmra.mxu1 %v1347_v33 }
 0x413   : > { %v1422_v35 = vpop.f32.mrf.mxu1 }
 0x414   : > { %v1423_v36 = vadd.f32 %v1422_v35, %v1364_v32 }
 0x416   : > { %1426 = vst [vmem:[%s445_s25] sm:$0x1] %v1423_v36 }
 0x417   : > { %2142 = shalt.err (!%p2139_p8)
}
 0x418   : > { %1916 = dma.vmem_to_hbm [thread:$0]  (%p2299_p5), %s1439_s30, 16, %s1441_s12, %s1428_s14  }
 0x41b   : > { %v1424_v37 = vpop.f32.mrf.mxu1 }
 0x41c PF: > { %s2474_s19 = sld [smem:[#allocation16_spill]]  ;;  %p1943_p9 = scmp.ge.s32.totalorder %s2191_s20, 2 }
 0x41e   : > { %p1932_p10 = pnand %p1943_p9, %p2303_p6 }
 0x420   : > { %p1933_p11 = pneg %p1932_p10 }
 0x422   : > { %s1452_s26 = sand.u32 1, %s2474_s19  }
 0x423   : > { %s1453_s28 = scalar_lea.sflag [#allocation5], %s1452_s26 }
 0x424   : > { %2172 = dma.done.wait (%p1933_p11), %s1453_s28, 16  }
 0x425   : > { %2174 = vsyncadd (%p1933_p11), %s1453_s28, 4294967280  ;;  %s2476_s20 = sld [smem:[#allocation18_spill]]  ;;  %s2479_s17 = smov %s2183_s18 }
 0x426   : > { %s2477_s29 = sld [smem:[#allocation17_spill]] }
 0x427   : > { %s2478_s19 = sld [smem:[#allocation19_spill]] }
 0x42b   : > { %p24_p12 = scmp.ge.s32.totalorder %s2476_s20, 4  }
 0x42c   : > { %s2480_s18 = smov %s2477_s29 }
 0x42d   :  { %26 = sbr.rel (!%p24_p12) target bundleno = 9 (0x9), region = 125 }
 0x432   :  { %1458 = vsyncpa [#allocation4], 1 }
 0x433   :  { %1460 = vsyncpa [#allocation4 + $0x1], 1 }
 0x434   :  { %1461 = vsyncpa [#allocation7], 1 }
 0x435   :  { %1462 = vsyncpa [#allocation10], 1 }
 0x436   :  { %1463 = vsyncpa [#allocation5], 1 }
 0x437   :  { %1465 = vsyncpa [#allocation5 + $0x1], 1 }

</bundles_post_ra>
